<compile_context>
chip_gen: v7x
topology: tpu7x:2x2x1
jax: 0.10.0
libtpu: 0.0.40
codegen_flags: <defaults>
</compile_context>

<pallas_src>
import jax
import jax.numpy as jnp
import numpy as np
from jax.experimental import pallas as pl
from jax.experimental.pallas import tpu as pltpu

# ----------------------------- problem sizes --------------------------------
BATCH = 4            # graphs per call
N_NODES = 16         # nodes per graph (src == dst, non-block graph)
IN_FEATS = 16        # in_feats
NUM_HEADS = 4        # num_heads
OUT_FEATS = 8        # out_feats (per head)
HD = NUM_HEADS * OUT_FEATS      # 32   (!= IN_FEATS -> res_fc is a Linear)
BN = BATCH * N_NODES            # 64   nodes in the batched (block-diag) graph

NEG_SLOPE = 0.01     # F.leaky_relu default
NEG_INF = -1e30      # additive mask for non-edges
MAX_CLAMP = -1e20    # keeps fully-masked rows (zero in-degree) at a = 0


# ------------------------------- Pallas kernel -------------------------------
def gat_kernel(feat_ref, wproj_ref, alr_ref, bias_ref, seg_ref, bmask_ref,
               out_ref):
    """Whole batch resident in VMEM, single grid step.

    feat_ref : (BN, F)        flattened node features of all graphs
    wproj_ref: (F, 2*H*D)     fused [W_fc | W_res]
    alr_ref  : (H*D, 2*H)     [blockdiag(attn_l) | blockdiag(attn_r)]
    bias_ref : (BN, H*BN)     additive mask, 0 on edges / -1e30 elsewhere,
                              already tiled per head (block-diag over graphs)
    seg_ref  : (H*BN, H)      segment-sum matrix  seg[h*BN+u, h'] = (h == h')
    bmask_ref: (H*BN, H*D)    block mask          bmask[h*BN+u, c] = (c//D == h)
    out_ref  : (N, B*H*D)     lane-dense output   out[n, b*HD+c] = rst[b*N+n, c]
    """
    # ---- fused input projection: fc and res_fc in one MXU pass -------------
    proj = jnp.dot(feat_ref[...], wproj_ref[...],
                   preferred_element_type=jnp.float32)          # (BN, 2HD)
    ft = proj[:, :HD]                                           # fc(feat)
    res = proj[:, HD:]                                          # res_fc(feat)

    # ---- all-head attention logits via one block-diagonal matmul -----------
    el_er = jnp.dot(ft, alr_ref[...],
                    preferred_element_type=jnp.float32)         # (BN, 2H)
    el_t = jnp.transpose(el_er[:, :NUM_HEADS])                  # (H, BN)
    er = el_er[:, NUM_HEADS:]                                   # (BN, H)

    # ---- head-stacked logits e[v, h*BN+u] = el[u,h] + er[v,h] --------------
    e_raw = jnp.concatenate(
        [er[:, h:h + 1] + el_t[h:h + 1, :] for h in range(NUM_HEADS)],
        axis=1)                                                 # (BN, H*BN)

    # ---- fused leaky_relu + mask + edge_softmax for all heads/graphs -------
    e_act = jnp.where(e_raw > 0.0, e_raw, NEG_SLOPE * e_raw)
    e_msk = e_act + bias_ref[...]                               # mask non-edges
    # per-dst-row stabilizer (same constant within every head segment, so the
    # softmax value is unchanged); clamp keeps zero-in-degree rows at a == 0.
    m = jnp.maximum(jnp.max(e_msk, axis=1, keepdims=True), MAX_CLAMP)
    p = jnp.exp(e_msk - m)                                      # masked -> 0
    denom = jnp.dot(p, seg_ref[...],
                    preferred_element_type=jnp.float32)         # (BN, H)
    dinv = 1.0 / jnp.maximum(denom, 1e-30)                      # exact divide

    # ---- block-diagonal aggregation: all heads in ONE MXU matmul -----------
    ft_bd = jnp.concatenate([ft] * NUM_HEADS, axis=0) * bmask_ref[...]
    agg = jnp.dot(p, ft_bd, preferred_element_type=jnp.float32)  # (BN, HD)
    dinv_d = jnp.concatenate(
        [jnp.broadcast_to(dinv[:, h:h + 1], (BN, OUT_FEATS))
         for h in range(NUM_HEADS)], axis=1)                    # (BN, HD)
    rst = agg * dinv_d + res                                    # normalize + residual

    # ---- ELU (alpha = 1) ----------------------------------------------------
    rst = jnp.where(rst > 0.0, rst, jnp.exp(jnp.minimum(rst, 0.0)) - 1.0)

    # ---- lane-dense (N, B*HD) = (16, 128) store -----------------------------
    out_ref[...] = jnp.concatenate(
        [rst[b * N_NODES:(b + 1) * N_NODES, :] for b in range(BATCH)], axis=1)


# ---------------------------------- wrapper ----------------------------------
@jax.jit
def efficient_gat_conv(feat, adj, w_fc, attn_l, attn_r, w_res):
    """feat: (B,N,F), adj: (B,N,N) in {0,1}, w_fc/w_res: (F,HD), attn_l/r: (H,D)."""
    b, n, f = feat.shape
    bn = b * n

    # --- one-time weight / mask layout plumbing (wrapper side, outside kernel)
    feat2 = feat.reshape(bn, f)                                    # (BN, F)
    w_proj = jnp.concatenate([w_fc, w_res], axis=1)                # (F, 2HD)

    eye_h = jnp.eye(NUM_HEADS, dtype=jnp.float32)
    al_bd = (attn_l[:, :, None] * eye_h[:, None, :]).reshape(HD, NUM_HEADS)
    ar_bd = (attn_r[:, :, None] * eye_h[:, None, :]).reshape(HD, NUM_HEADS)
    a_lr = jnp.concatenate([al_bd, ar_bd], axis=1)                 # (HD, 2H)

    # block-diagonal batched adjacency (cross-graph entries = no edge)
    eye_b = jnp.eye(b, dtype=jnp.float32)
    adj_bd = (eye_b[:, None, :, None] * adj[:, :, None, :]).reshape(bn, bn)
    # additive mask, pre-tiled per head: 0 on edges, -1e30 elsewhere
    bias_cat = jnp.tile(jnp.where(adj_bd > 0, 0.0, NEG_INF),
                        (1, NUM_HEADS)).astype(jnp.float32)        # (BN, H*BN)

    # segmented-sum matrix for per-head softmax denominators (one MXU op)
    seg = jnp.repeat(eye_h, bn, axis=0)                            # (H*BN, H)
    # block mask selecting head h's feature columns for row block h
    bmask = jnp.kron(eye_h, jnp.ones((bn, OUT_FEATS), jnp.float32))  # (H*BN, HD)

    out = pl.pallas_call(
        gat_kernel,
        out_shape=jax.ShapeDtypeStruct((n, b * HD), jnp.float32),
        grid=(1,),                               # single step for the whole batch
        in_specs=[
            pl.BlockSpec((bn, f), lambda i: (0, 0)),
            pl.BlockSpec((f, 2 * HD), lambda i: (0, 0)),
            pl.BlockSpec((HD, 2 * NUM_HEADS), lambda i: (0, 0)),
            pl.BlockSpec((bn, NUM_HEADS * bn), lambda i: (0, 0)),
            pl.BlockSpec((NUM_HEADS * bn, NUM_HEADS), lambda i: (0, 0)),
            pl.BlockSpec((NUM_HEADS * bn, HD), lambda i: (0, 0)),
        ],
        out_specs=pl.BlockSpec((n, b * HD), lambda i: (0, 0)),
        compiler_params=pltpu.CompilerParams(
            dimension_semantics=("arbitrary",)),   # no megacore split for ~1 us of work
    )(feat2, w_proj, a_lr, bias_cat, seg, bmask)

    # lane-dense (N, B*HD) -> (B, N, H*D): free layout plumbing outside the kernel
    return out.reshape(n, b, HD).transpose(1, 0, 2)


# ------------------------- plain-JAX reference (check) -----------------------
def gat_reference(feat, adj, w_fc, attn_l, attn_r, w_res):
    def single(feat1, adj1):
        ft = (feat1 @ w_fc).reshape(N_NODES, NUM_HEADS, OUT_FEATS)
        el = jnp.sum(ft * attn_l[None], axis=-1)                 # (N, H)
        er = jnp.sum(ft * attn_r[None], axis=-1)                 # (N, H)
        e = er[:, None, :] + el[None, :, :]                      # (Ndst, Nsrc, H)
        e = jnp.where(e > 0, e, NEG_SLOPE * e)
        e = jnp.where(adj1[..., None] > 0, e, NEG_INF)
        m = jnp.max(e, axis=1, keepdims=True)
        p = jnp.exp(e - m) * adj1[..., None]
        a = p / jnp.maximum(jnp.sum(p, axis=1, keepdims=True), 1e-30)
        rst = jnp.einsum("vuh,uhd->vhd", a, ft)
        rst = rst + (feat1 @ w_res).reshape(N_NODES, NUM_HEADS, OUT_FEATS)
        rst = jnp.where(rst > 0, rst, jnp.exp(jnp.minimum(rst, 0.0)) - 1.0)
        return rst.reshape(N_NODES, HD)
    return jax.vmap(single)(feat, adj)


# ------------------------------------ main -----------------------------------
if __name__ == "__main__":
    key = jax.random.PRNGKey(0)
    k_feat, k_adj, k_fc, k_al, k_ar, k_res = jax.random.split(key, 6)

    # node features, batched over graphs
    feat = jax.random.normal(k_feat, (BATCH, N_NODES, IN_FEATS), dtype=jnp.float32)

    # dense adjacency adj[b, dst, src] with self-loops (in-degree >= 1)
    rand = jax.random.uniform(k_adj, (BATCH, N_NODES, N_NODES))
    adj = ((rand < 0.3) | jnp.eye(N_NODES, dtype=bool)[None]).astype(jnp.float32)

    # deterministic xavier-normal-style init (gain = sqrt(2), 'relu')
    gain = np.sqrt(2.0)

    def xavier(k, shape, fan_in, fan_out):
        std = gain * np.sqrt(2.0 / (fan_in + fan_out))
        return std * jax.random.normal(k, shape, dtype=jnp.float32)

    # fc: torch Linear(in_feats, H*D, bias=False) -> stored here as (F, H*D)
    w_fc = xavier(k_fc, (IN_FEATS, HD), IN_FEATS, HD)
    # attn_l / attn_r: torch shape (1, H, D) -> stored as (H, D)
    attn_l = xavier(k_al, (NUM_HEADS, OUT_FEATS), NUM_HEADS * OUT_FEATS, OUT_FEATS)
    attn_r = xavier(k_ar, (NUM_HEADS, OUT_FEATS), NUM_HEADS * OUT_FEATS, OUT_FEATS)
    # res_fc: torch Linear(in_feats, H*D, bias=False) -> stored as (F, H*D)
    w_res = xavier(k_res, (IN_FEATS, HD), IN_FEATS, HD)

    out = efficient_gat_conv(feat, adj, w_fc, attn_l, attn_r, w_res)
    out = jax.block_until_ready(out)

    ref = gat_reference(feat, adj, w_fc, attn_l, attn_r, w_res)
    # tolerance covers the different f32->bf16 MXU pass-splitting / summation
    # groupings between the Pallas matmuls and the XLA reference matmuls
    # (both are logically float32; the softmax divide itself is exact).
    np.testing.assert_allclose(np.asarray(out), np.asarray(ref),
                               rtol=1e-2, atol=1e-2)

    # TODO(synk): feat_drop / attn_drop / sparse-attention thresholding only act
    # in training mode; eval-mode forward (implemented here) treats them as identity.
    print("KERNEL_OK")
</pallas_src>

<mosaic_0001>
module attributes {stable_mosaic.version = 11 : i64} {
  func.func @gat_kernel(%arg0: i32, %arg1: memref<64x16xf32, #tpu.memory_space<vmem>>, %arg2: memref<16x64xf32, #tpu.memory_space<vmem>>, %arg3: memref<32x8xf32, #tpu.memory_space<vmem>>, %arg4: memref<64x256xf32, #tpu.memory_space<vmem>>, %arg5: memref<256x4xf32, #tpu.memory_space<vmem>>, %arg6: memref<256x32xf32, #tpu.memory_space<vmem>>, %arg7: memref<16x128xf32, #tpu.memory_space<vmem>>) attributes {dimension_semantics = [#tpu.dimension_semantics<arbitrary>], iteration_bounds = array<i64: 1>, scalar_prefetch = 0 : i64, scratch_operands = 0 : i64, tpu.core_type = #tpu.core_type<tc>, window_params = [{pipeline_mode = #tpu.pipeline_mode<synchronous>, transform_indices = @transform_0, window_bounds = array<i64: 64, 16>}, {pipeline_mode = #tpu.pipeline_mode<synchronous>, transform_indices = @transform_1, window_bounds = array<i64: 16, 64>}, {pipeline_mode = #tpu.pipeline_mode<synchronous>, transform_indices = @transform_2, window_bounds = array<i64: 32, 8>}, {pipeline_mode = #tpu.pipeline_mode<synchronous>, transform_indices = @transform_3, window_bounds = array<i64: 64, 256>}, {pipeline_mode = #tpu.pipeline_mode<synchronous>, transform_indices = @transform_4, window_bounds = array<i64: 256, 4>}, {pipeline_mode = #tpu.pipeline_mode<synchronous>, transform_indices = @transform_5, window_bounds = array<i64: 256, 32>}, {pipeline_mode = #tpu.pipeline_mode<synchronous>, transform_indices = @transform_6, window_bounds = array<i64: 16, 128>}]} {
    %c0 = arith.constant 0 : index
    %c0_0 = arith.constant 0 : index
    %0 = vector.load %arg1[%c0, %c0_0] : memref<64x16xf32, #tpu.memory_space<vmem>>, vector<64x16xf32>
    %c0_1 = arith.constant 0 : index
    %c0_2 = arith.constant 0 : index
    %1 = vector.load %arg2[%c0_1, %c0_2] : memref<16x64xf32, #tpu.memory_space<vmem>>, vector<16x64xf32>
    %cst = arith.constant dense<0.000000e+00> : vector<64x64xf32>
    %2 = tpu.matmul %0, %1, %cst {dimension_numbers = #tpu.dot_dimension_numbers<[1], [0], [0], [1], [0, 0, 1, 1], [], []>} : vector<64x16xf32>, vector<16x64xf32>, vector<64x64xf32> -> vector<64x64xf32>
    %3 = vector.extract_strided_slice %2 {offsets = [0, 0], sizes = [64, 32], strides = [1, 1]} : vector<64x64xf32> to vector<64x32xf32>
    %4 = vector.extract_strided_slice %2 {offsets = [0, 32], sizes = [64, 32], strides = [1, 1]} : vector<64x64xf32> to vector<64x32xf32>
    %c0_3 = arith.constant 0 : index
    %c0_4 = arith.constant 0 : index
    %5 = vector.load %arg3[%c0_3, %c0_4] : memref<32x8xf32, #tpu.memory_space<vmem>>, vector<32x8xf32>
    %cst_5 = arith.constant dense<0.000000e+00> : vector<64x8xf32>
    %6 = tpu.matmul %3, %5, %cst_5 {dimension_numbers = #tpu.dot_dimension_numbers<[1], [0], [0], [1], [0, 0, 1, 1], [], []>} : vector<64x32xf32>, vector<32x8xf32>, vector<64x8xf32> -> vector<64x8xf32>
    %7 = vector.extract_strided_slice %6 {offsets = [0, 0], sizes = [64, 4], strides = [1, 1]} : vector<64x8xf32> to vector<64x4xf32>
    %8 = tpu.transpose %7, [1, 0] : vector<64x4xf32> -> vector<4x64xf32>
    %9 = vector.extract_strided_slice %6 {offsets = [0, 4], sizes = [64, 4], strides = [1, 1]} : vector<64x8xf32> to vector<64x4xf32>
    %10 = vector.extract_strided_slice %9 {offsets = [0, 0], sizes = [64, 1], strides = [1, 1]} : vector<64x4xf32> to vector<64x1xf32>
    %11 = vector.extract_strided_slice %8 {offsets = [0, 0], sizes = [1, 64], strides = [1, 1]} : vector<4x64xf32> to vector<1x64xf32>
    %12 = vector.broadcast %10 : vector<64x1xf32> to vector<64x64xf32>
    %13 = vector.broadcast %11 : vector<1x64xf32> to vector<64x64xf32>
    %14 = arith.addf %12, %13 : vector<64x64xf32>
    %15 = vector.extract_strided_slice %9 {offsets = [0, 1], sizes = [64, 1], strides = [1, 1]} : vector<64x4xf32> to vector<64x1xf32>
    %16 = vector.extract_strided_slice %8 {offsets = [1, 0], sizes = [1, 64], strides = [1, 1]} : vector<4x64xf32> to vector<1x64xf32>
    %17 = vector.broadcast %15 : vector<64x1xf32> to vector<64x64xf32>
    %18 = vector.broadcast %16 : vector<1x64xf32> to vector<64x64xf32>
    %19 = arith.addf %17, %18 : vector<64x64xf32>
    %20 = vector.extract_strided_slice %9 {offsets = [0, 2], sizes = [64, 1], strides = [1, 1]} : vector<64x4xf32> to vector<64x1xf32>
    %21 = vector.extract_strided_slice %8 {offsets = [2, 0], sizes = [1, 64], strides = [1, 1]} : vector<4x64xf32> to vector<1x64xf32>
    %22 = vector.broadcast %20 : vector<64x1xf32> to vector<64x64xf32>
    %23 = vector.broadcast %21 : vector<1x64xf32> to vector<64x64xf32>
    %24 = arith.addf %22, %23 : vector<64x64xf32>
    %25 = vector.extract_strided_slice %9 {offsets = [0, 3], sizes = [64, 1], strides = [1, 1]} : vector<64x4xf32> to vector<64x1xf32>
    %26 = vector.extract_strided_slice %8 {offsets = [3, 0], sizes = [1, 64], strides = [1, 1]} : vector<4x64xf32> to vector<1x64xf32>
    %27 = vector.broadcast %25 : vector<64x1xf32> to vector<64x64xf32>
    %28 = vector.broadcast %26 : vector<1x64xf32> to vector<64x64xf32>
    %29 = arith.addf %27, %28 : vector<64x64xf32>
    %30 = tpu.concatenate %14, %19, %24, %29 in 1 : vector<64x64xf32>, vector<64x64xf32>, vector<64x64xf32>, vector<64x64xf32> -> vector<64x256xf32>
    %cst_6 = arith.constant 0.000000e+00 : f32
    %31 = vector.broadcast %cst_6 : f32 to vector<64x256xf32>
    %32 = arith.cmpf ogt, %30, %31 : vector<64x256xf32>
    %cst_7 = arith.constant 0.00999999977 : f32
    %33 = vector.broadcast %cst_7 : f32 to vector<64x256xf32>
    %34 = arith.mulf %33, %30 : vector<64x256xf32>
    %35 = arith.select %32, %30, %34 : vector<64x256xi1>, vector<64x256xf32>
    %c0_8 = arith.constant 0 : index
    %c0_9 = arith.constant 0 : index
    %36 = vector.load %arg4[%c0_8, %c0_9] : memref<64x256xf32, #tpu.memory_space<vmem>>, vector<64x256xf32>
    %37 = arith.addf %35, %36 : vector<64x256xf32>
    %cst_10 = arith.constant dense<0xFF800000> : vector<64xf32>
    %38 = vector.multi_reduction <maximumf>, %37, %cst_10 [1] : vector<64x256xf32> to vector<64xf32>
    %39 = vector.shape_cast %38 : vector<64xf32> to vector<64x1xf32>
    %cst_11 = arith.constant -1.000000e+20 : f32
    %40 = vector.broadcast %cst_11 : f32 to vector<64x1xf32>
    %41 = arith.maximumf %39, %40 : vector<64x1xf32>
    %42 = vector.broadcast %41 : vector<64x1xf32> to vector<64x256xf32>
    %43 = arith.subf %37, %42 : vector<64x256xf32>
    %44 = math.exp %43 : vector<64x256xf32>
    %c0_12 = arith.constant 0 : index
    %c0_13 = arith.constant 0 : index
    %45 = vector.load %arg5[%c0_12, %c0_13] : memref<256x4xf32, #tpu.memory_space<vmem>>, vector<256x4xf32>
    %cst_14 = arith.constant dense<0.000000e+00> : vector<64x4xf32>
    %46 = tpu.matmul %44, %45, %cst_14 {dimension_numbers = #tpu.dot_dimension_numbers<[1], [0], [0], [1], [0, 0, 1, 1], [], []>} : vector<64x256xf32>, vector<256x4xf32>, vector<64x4xf32> -> vector<64x4xf32>
    %cst_15 = arith.constant 1.000000e-30 : f32
    %47 = vector.broadcast %cst_15 : f32 to vector<64x4xf32>
    %48 = arith.maximumf %46, %47 : vector<64x4xf32>
    %cst_16 = arith.constant 1.000000e+00 : f32
    %49 = vector.broadcast %cst_16 : f32 to vector<64x4xf32>
    %50 = arith.divf %49, %48 : vector<64x4xf32>
    %51 = tpu.concatenate %3, %3, %3, %3 in 0 : vector<64x32xf32>, vector<64x32xf32>, vector<64x32xf32>, vector<64x32xf32> -> vector<256x32xf32>
    %c0_17 = arith.constant 0 : index
    %c0_18 = arith.constant 0 : index
    %52 = vector.load %arg6[%c0_17, %c0_18] : memref<256x32xf32, #tpu.memory_space<vmem>>, vector<256x32xf32>
    %53 = arith.mulf %51, %52 : vector<256x32xf32>
    %cst_19 = arith.constant dense<0.000000e+00> : vector<64x32xf32>
    %54 = tpu.matmul %44, %53, %cst_19 {dimension_numbers = #tpu.dot_dimension_numbers<[1], [0], [0], [1], [0, 0, 1, 1], [], []>} : vector<64x256xf32>, vector<256x32xf32>, vector<64x32xf32> -> vector<64x32xf32>
    %55 = vector.extract_strided_slice %50 {offsets = [0, 0], sizes = [64, 1], strides = [1, 1]} : vector<64x4xf32> to vector<64x1xf32>
    %56 = vector.shape_cast %55 : vector<64x1xf32> to vector<64x1xf32>
    %57 = vector.broadcast %56 : vector<64x1xf32> to vector<64x8xf32>
    %58 = vector.extract_strided_slice %50 {offsets = [0, 1], sizes = [64, 1], strides = [1, 1]} : vector<64x4xf32> to vector<64x1xf32>
    %59 = vector.shape_cast %58 : vector<64x1xf32> to vector<64x1xf32>
    %60 = vector.broadcast %59 : vector<64x1xf32> to vector<64x8xf32>
    %61 = vector.extract_strided_slice %50 {offsets = [0, 2], sizes = [64, 1], strides = [1, 1]} : vector<64x4xf32> to vector<64x1xf32>
    %62 = vector.shape_cast %61 : vector<64x1xf32> to vector<64x1xf32>
    %63 = vector.broadcast %62 : vector<64x1xf32> to vector<64x8xf32>
    %64 = vector.extract_strided_slice %50 {offsets = [0, 3], sizes = [64, 1], strides = [1, 1]} : vector<64x4xf32> to vector<64x1xf32>
    %65 = vector.shape_cast %64 : vector<64x1xf32> to vector<64x1xf32>
    %66 = vector.broadcast %65 : vector<64x1xf32> to vector<64x8xf32>
    %67 = tpu.concatenate %57, %60, %63, %66 in 1 : vector<64x8xf32>, vector<64x8xf32>, vector<64x8xf32>, vector<64x8xf32> -> vector<64x32xf32>
    %68 = arith.mulf %54, %67 : vector<64x32xf32>
    %69 = arith.addf %68, %4 : vector<64x32xf32>
    %cst_20 = arith.constant 0.000000e+00 : f32
    %70 = vector.broadcast %cst_20 : f32 to vector<64x32xf32>
    %71 = arith.cmpf ogt, %69, %70 : vector<64x32xf32>
    %cst_21 = arith.constant 0.000000e+00 : f32
    %72 = vector.broadcast %cst_21 : f32 to vector<64x32xf32>
    %73 = arith.minimumf %69, %72 : vector<64x32xf32>
    %74 = math.exp %73 : vector<64x32xf32>
    %cst_22 = arith.constant 1.000000e+00 : f32
    %75 = vector.broadcast %cst_22 : f32 to vector<64x32xf32>
    %76 = arith.subf %74, %75 : vector<64x32xf32>
    %77 = arith.select %71, %69, %76 : vector<64x32xi1>, vector<64x32xf32>
    %78 = vector.extract_strided_slice %77 {offsets = [0, 0], sizes = [16, 32], strides = [1, 1]} : vector<64x32xf32> to vector<16x32xf32>
    %79 = vector.extract_strided_slice %77 {offsets = [16, 0], sizes = [16, 32], strides = [1, 1]} : vector<64x32xf32> to vector<16x32xf32>
    %80 = vector.extract_strided_slice %77 {offsets = [32, 0], sizes = [16, 32], strides = [1, 1]} : vector<64x32xf32> to vector<16x32xf32>
    %81 = vector.extract_strided_slice %77 {offsets = [48, 0], sizes = [16, 32], strides = [1, 1]} : vector<64x32xf32> to vector<16x32xf32>
    %82 = tpu.concatenate %78, %79, %80, %81 in 1 : vector<16x32xf32>, vector<16x32xf32>, vector<16x32xf32>, vector<16x32xf32> -> vector<16x128xf32>
    %c0_23 = arith.constant 0 : index
    %c0_24 = arith.constant 0 : index
    %83 = vector.load %arg7[%c0_23, %c0_24] : memref<16x128xf32, #tpu.memory_space<vmem>>, vector<16x128xf32>
    tpu.vector_store %arg7[%c0_23, %c0_24], %82 {strides = array<i32>} : memref<16x128xf32, #tpu.memory_space<vmem>>, vector<16x128xf32>,
    return
  }
  func.func @transform_0(%arg0: i32) -> (i32, i32) {
    %c0_i32 = arith.constant 0 : i32
    %c0_i32_0 = arith.constant 0 : i32
    %c0_i32_1 = arith.constant 0 : i32
    return %c0_i32, %c0_i32_0 : i32, i32
  }
  func.func @transform_1(%arg0: i32) -> (i32, i32) {
    %c0_i32 = arith.constant 0 : i32
    %c0_i32_0 = arith.constant 0 : i32
    %c0_i32_1 = arith.constant 0 : i32
    return %c0_i32, %c0_i32_0 : i32, i32
  }
  func.func @transform_2(%arg0: i32) -> (i32, i32) {
    %c0_i32 = arith.constant 0 : i32
    %c0_i32_0 = arith.constant 0 : i32
    %c0_i32_1 = arith.constant 0 : i32
    return %c0_i32, %c0_i32_0 : i32, i32
  }
  func.func @transform_3(%arg0: i32) -> (i32, i32) {
    %c0_i32 = arith.constant 0 : i32
    %c0_i32_0 = arith.constant 0 : i32
    %c0_i32_1 = arith.constant 0 : i32
    return %c0_i32, %c0_i32_0 : i32, i32
  }
  func.func @transform_4(%arg0: i32) -> (i32, i32) {
    %c0_i32 = arith.constant 0 : i32
    %c0_i32_0 = arith.constant 0 : i32
    %c0_i32_1 = arith.constant 0 : i32
    return %c0_i32, %c0_i32_0 : i32, i32
  }
  func.func @transform_5(%arg0: i32) -> (i32, i32) {
    %c0_i32 = arith.constant 0 : i32
    %c0_i32_0 = arith.constant 0 : i32
    %c0_i32_1 = arith.constant 0 : i32
    return %c0_i32, %c0_i32_0 : i32, i32
  }
  func.func @transform_6(%arg0: i32) -> (i32, i32) {
    %c0_i32 = arith.constant 0 : i32
    %c0_i32_0 = arith.constant 0 : i32
    %c0_i32_1 = arith.constant 0 : i32
    return %c0_i32, %c0_i32_0 : i32, i32
  }
}

</mosaic_0001>

<bundles_post_ra>
// kernel: tile.9
= control target key start
LH: loop header
LB: loop body
LE: loop exit
PB: predicated region body
PF: predicated region fallthrough
CT: control target
= control target key end

     0   :  { %s1116_s22 = smov 3  ;;  %vm322_vm0 = vcmask 523264   ;;  %s1118_s23 = smov 3  ;;  %vm706_vm1 = vcmask 1047556   ;;  %vm710_vm2 = vcmask 1048064   ;;  %s1702_s0 = inlined_call_operand.vmem [shape: f32[64,4,64], index: 0, kind: input, shape index: {}]   ;;  %s1703_s1 = inlined_call_operand.vmem [shape: f32[64,256], index: 1, kind: output, shape index: {}]  }
   0x1   :  { %v995_v0 = vld [vmem:[%s1702_s0 + $0x1c] sm:$0xf]  ;;  %v996_v1 = vld [vmem:[%s1702_s0 + $0x18] sm:$0xf]  ;;  %v997_v2 = vld [vmem:[%s1702_s0 + $0x14] sm:$0xf] }
   0x2   :  { %288 = vst [vmem:[#allocation0 + $0x38] sm:$0xf] %v995_v0  ;;  %293 = vst [vmem:[#allocation0 + $0x30] sm:$0xf] %v996_v1  ;;  %v998_v3 = vld [vmem:[%s1702_s0 + $0x10] sm:$0xf] }
   0x3   :  { %298 = vst [vmem:[#allocation0 + $0x28] sm:$0xf] %v997_v2  ;;  %v999_v4 = vld [vmem:[%s1702_s0 + $0xc] sm:$0xf]  ;;  %v1000_v5 = vld [vmem:[%s1702_s0 + $0x8] sm:$0xf] }
   0x4   :  { %303 = vst [vmem:[#allocation0 + $0x20] sm:$0xf] %v998_v3  ;;  %308 = vst [vmem:[#allocation0 + $0x18] sm:$0xf] %v999_v4  ;;  %v1001_v6 = vld [vmem:[%s1702_s0 + $0x4] sm:$0xf] }
   0x5   :  { %313 = vst [vmem:[#allocation0 + $0x10] sm:$0xf] %v1000_v5  ;;  %v318_v7 = vld [vmem:[%s1702_s0] sm:$0xf]  ;;  %317 = vst [vmem:[#allocation0 + $0x8] sm:$0xf] %v1001_v6 }
   0x6   :  { %319 = vst [vmem:[#allocation0] sm:$0xf] %v318_v7  ;;  %s1120_s24 = smov 3  ;;  %v994_v8 = vld [vmem:[%s1702_s0 + $0x20] sm:$0xf]  ;;  %s337_s27 = smov 3 }
   0x7   :  { %s343_s28 = smov 3  ;;  %283 = vst [vmem:[#allocation0 + $0x40] sm:$0xf] %v994_v8  ;;  %v963_v9 = vld [vmem:[%s1702_s0 + $0x9c] sm:$0xf]  ;;  %s349_s4 = smov 3 }
   0x8   :  { %v964_v10 = vld [vmem:[%s1702_s0 + $0x98] sm:$0xf]  ;;  %s355_s5 = smov 3  ;;  %128 = vst [vmem:[#allocation0 + $0x138] sm:$0xf] %v963_v9  ;;  %s1137_s10 = smov 3 }
   0x9   :  { %133 = vst [vmem:[#allocation0 + $0x130] sm:$0xf] %v964_v10  ;;  %v965_v11 = vld [vmem:[%s1702_s0 + $0x94] sm:$0xf]  ;;  %v966_v12 = vld [vmem:[%s1702_s0 + $0x90] sm:$0xf] }
   0xa   :  { %138 = vst [vmem:[#allocation0 + $0x128] sm:$0xf] %v965_v11  ;;  %143 = vst [vmem:[#allocation0 + $0x120] sm:$0xf] %v966_v12  ;;  %v967_v13 = vld [vmem:[%s1702_s0 + $0x8c] sm:$0xf] }
   0xb   :  { %v968_v14 = vld [vmem:[%s1702_s0 + $0x88] sm:$0xf]  ;;  %148 = vst [vmem:[#allocation0 + $0x118] sm:$0xf] %v967_v13  ;;  %v969_v15 = vld [vmem:[%s1702_s0 + $0x84] sm:$0xf] }
   0xc   :  { %153 = vst [vmem:[#allocation0 + $0x110] sm:$0xf] %v968_v14  ;;  %v970_v16 = vld [vmem:[%s1702_s0 + $0x80] sm:$0xf]  ;;  %v971_v17 = vld [vmem:[%s1702_s0 + $0x7c] sm:$0xf] }
   0xd   :  { %v350_v18 = vld [vmem:[#allocation0 + $0x28] ss:$2 sm:%s349_s4]   ;;  %158 = vst [vmem:[#allocation0 + $0x108] sm:$0xf] %v969_v15  ;;  %163 = vst [vmem:[#allocation0 + $0x100] sm:$0xf] %v970_v16 }
   0xe   :  { %v356_v19 = vld [vmem:[#allocation0 + $0x30] ss:$2 sm:%s355_s5]   ;;  %168 = vst [vmem:[#allocation0 + $0xf8] sm:$0xf] %v971_v17  ;;  %s1154_s21 = smov 3  ;;  %s1156_s25 = smov 3 }
   0xf   :  { %v332_v20 = vld [vmem:[#allocation0 + $0x10] ss:$2 sm:%s1120_s24]   ;;  %v344_v22 = vld [vmem:[#allocation0 + $0x20] ss:$2 sm:%s343_s28]   ;;  %s517_s4 = smov 3  ;;  %s523_s5 = smov 3 }
  0x10   :  { %v338_v21 = vld [vmem:[#allocation0 + $0x18] ss:$2 sm:%s337_s27]   ;;  %1006 = vst.msk [vmem:[%s1703_s1 + $0x5] ss:$8 sm:$0x3] %vm322_vm0, %v350_v18   ;;  %s535_s11 = smov 3 }
  0x11   :  { %1007 = vst.msk [vmem:[%s1703_s1 + $0x6] ss:$8 sm:$0x3] %vm322_vm0, %v356_v19   ;;  %v321_v23 = vld [vmem:[#allocation0] ss:$2 sm:%s1116_s22]   ;;  %s1081_s14 = smov 64  }
  0x12   :  { %v326_v24 = vld [vmem:[#allocation0 + $0x8] ss:$2 sm:%s1118_s23]   ;;  %1003 = vst.msk [vmem:[%s1703_s1 + $0x2] ss:$8 sm:$0x3] %vm322_vm0, %v332_v20   ;;  %s541_s17 = smov 3 }
  0x13   :  { %1004 = vst.msk [vmem:[%s1703_s1 + $0x3] ss:$8 sm:$0x3] %vm322_vm0, %v338_v21   ;;  %1005 = vst.msk [vmem:[%s1703_s1 + $0x4] ss:$8 sm:$0x3] %vm322_vm0, %v344_v22  }
  0x14   :  { %323 = vst.msk [vmem:[%s1703_s1] ss:$8 sm:$0x3] %vm322_vm0, %v321_v23   ;;  %1002 = vst.msk [vmem:[%s1703_s1 + $0x1] ss:$8 sm:$0x3] %vm322_vm0, %v326_v24  }
  0x15   :  { %v703_v25 = vld [vmem:[#allocation0 + $0x1] ss:$8 sm:$0xf]   ;;  %v362_v28 = vld [vmem:[#allocation0 + $0x38] ss:$2 sm:%s1137_s10]   ;;  %s529_s10 = smov 3 }
  0x16   :  { %v705_v26 = vld [vmem:[#allocation0 + $0x1] ss:$8 sm:$0xf0]   ;;  %1008 = vst.msk [vmem:[%s1703_s1 + $0x7] ss:$8 sm:$0x3] %vm322_vm0, %v362_v28  }
  0x17   :  { %v707_v27 = vsel %vm706_vm1, %v705_v26, %v703_v25  ;;  %v962_v29 = vld [vmem:[%s1702_s0 + $0xa0] sm:$0xf]  ;;  %s547_s18 = smov 3  ;;  %v979_v31 = vld [vmem:[%s1702_s0 + $0x5c] sm:$0xf]  ;;  %s553_s6 = smov 3 }
  0x18   :  { %708 = vrot.lane.b32.xlu0 %v707_v27, %s1081_s14  ;;  %v536_v30 = vld [vmem:[#allocation0 + $0x120] ss:$2 sm:%s535_s11]   ;;  %123 = vst [vmem:[#allocation0 + $0x140] sm:$0xf] %v962_v29  ;;  %v524_v32 = vld [vmem:[#allocation0 + $0x110] ss:$2 sm:%s523_s5]  }
  0x19   :  { %v530_v33 = vld [vmem:[#allocation0 + $0x118] ss:$2 sm:%s529_s10]   ;;  %1037 = vst.msk [vmem:[%s1703_s1 + $0x44] ss:$8 sm:$0x3] %vm322_vm0, %v536_v30   ;;  %s1239_s11 = smov 3 }
  0x1a   :  { %v542_v34 = vld [vmem:[#allocation0 + $0x128] ss:$2 sm:%s541_s17]   ;;  %208 = vst [vmem:[#allocation0 + $0xb8] sm:$0xf] %v979_v31  ;;  %v506_v35 = vld [vmem:[#allocation0 + $0xf8] ss:$2 sm:%s1154_s21]  }
  0x1b   :  { %v512_v36 = vld [vmem:[#allocation0 + $0x100] ss:$2 sm:%s1156_s25]   ;;  %1035 = vst.msk [vmem:[%s1703_s1 + $0x42] ss:$8 sm:$0x3] %vm322_vm0, %v524_v32   ;;  %s1261_s27 = smov 3 }
  0x1c   :  { %v518_v37 = vld [vmem:[#allocation0 + $0x108] ss:$2 sm:%s517_s4]   ;;  %1036 = vst.msk [vmem:[%s1703_s1 + $0x43] ss:$8 sm:$0x3] %vm322_vm0, %v530_v33   ;;  %s1263_s28 = smov 3 }
  0x1d   :  { %1038 = vst.msk [vmem:[%s1703_s1 + $0x45] ss:$8 sm:$0x3] %vm322_vm0, %v542_v34   ;;  %1032 = vst.msk [vmem:[%s1703_s1 + $0x37] ss:$8 sm:$0x3] %vm322_vm0, %v506_v35  }
  0x1e   :  { %1033 = vst.msk [vmem:[%s1703_s1 + $0x40] ss:$8 sm:$0x3] %vm322_vm0, %v512_v36   ;;  %1034 = vst.msk [vmem:[%s1703_s1 + $0x41] ss:$8 sm:$0x3] %vm322_vm0, %v518_v37  }
  0x1f   :  { %v724_v38 = vld [vmem:[#allocation0 + $0x101] ss:$8 sm:$0xf]   ;;  %v548_v39 = vld [vmem:[#allocation0 + $0x130] ss:$2 sm:%s547_s18]   ;;  %s433_s2 = smov 3 }
  0x20   :  { %v726_v40 = vld [vmem:[#allocation0 + $0x101] ss:$8 sm:$0xf0]   ;;  %1039 = vst.msk [vmem:[%s1703_s1 + $0x46] ss:$8 sm:$0x3] %vm322_vm0, %v548_v39  }
  0x21   :  { %v980_v41 = vld [vmem:[%s1702_s0 + $0x58] sm:$0xf]  ;;  %v728_v42 = vsel %vm706_vm1, %v726_v40, %v724_v38  ;;  %v981_v43 = vld [vmem:[%s1702_s0 + $0x54] sm:$0xf]  ;;  %v982_v44 = vld [vmem:[%s1702_s0 + $0x50] sm:$0xf] }
  0x22   :  { %213 = vst [vmem:[#allocation0 + $0xb0] sm:$0xf] %v980_v41  ;;  %v983_v45 = vld [vmem:[%s1702_s0 + $0x4c] sm:$0xf]  ;;  %729 = vrot.lane.b32.xlu1 %v728_v42, %s1081_s14  ;;  %218 = vst [vmem:[#allocation0 + $0xa8] sm:$0xf] %v981_v43 }
  0x23   :  { %223 = vst [vmem:[#allocation0 + $0xa0] sm:$0xf] %v982_v44  ;;  %228 = vst [vmem:[#allocation0 + $0x98] sm:$0xf] %v983_v45  ;;  %v984_v46 = vld [vmem:[%s1702_s0 + $0x48] sm:$0xf] }
  0x24   :  { %v985_v47 = vld [vmem:[%s1702_s0 + $0x44] sm:$0xf]  ;;  %v986_v48 = vld [vmem:[%s1702_s0 + $0x40] sm:$0xf]  ;;  %233 = vst [vmem:[#allocation0 + $0x90] sm:$0xf] %v984_v46 }
  0x25   :  { %v554_v49 = vld [vmem:[#allocation0 + $0x138] ss:$2 sm:%s553_s6]   ;;  %238 = vst [vmem:[#allocation0 + $0x88] sm:$0xf] %v985_v47  ;;  %243 = vst [vmem:[#allocation0 + $0x80] sm:$0xf] %v986_v48 }
  0x26   :  { %v978_v50 = vld [vmem:[%s1702_s0 + $0x60] sm:$0xf]  ;;  %1040 = vst.msk [vmem:[%s1703_s1 + $0x47] ss:$8 sm:$0x3] %vm322_vm0, %v554_v49   ;;  %s439_s3 = smov 3 }
  0x27   :  { %203 = vst [vmem:[#allocation0 + $0xc0] sm:$0xf] %v978_v50  ;;  %v947_v51 = vld [vmem:[%s1702_s0 + $0xdc] sm:$0xf]  ;;  %v948_v52 = vld [vmem:[%s1702_s0 + $0xd8] sm:$0xf] }
  0x28   :  { %s445_s8 = smov 3  ;;  %s451_s9 = smov 3  ;;  %48 = vst [vmem:[#allocation0 + $0x1b8] sm:$0xf] %v947_v51  ;;  %53 = vst [vmem:[#allocation0 + $0x1b0] sm:$0xf] %v948_v52 }
  0x29   :  { %v949_v53 = vld [vmem:[%s1702_s0 + $0xd4] sm:$0xf]  ;;  %v950_v54 = vld [vmem:[%s1702_s0 + $0xd0] sm:$0xf]  ;;  %s1284_s16 = smov 3  ;;  %s1292_s24 = smov 3 }
  0x2a   :  { %58 = vst [vmem:[#allocation0 + $0x1a8] sm:$0xf] %v949_v53  ;;  %63 = vst [vmem:[#allocation0 + $0x1a0] sm:$0xf] %v950_v54  ;;  %v951_v55 = vld [vmem:[%s1702_s0 + $0xcc] sm:$0xf] }
  0x2b   :  { %v952_v56 = vld [vmem:[%s1702_s0 + $0xc8] sm:$0xf]  ;;  %68 = vst [vmem:[#allocation0 + $0x198] sm:$0xf] %v951_v55  ;;  %v953_v57 = vld [vmem:[%s1702_s0 + $0xc4] sm:$0xf] }
  0x2c   :  { %73 = vst [vmem:[#allocation0 + $0x190] sm:$0xf] %v952_v56  ;;  %v954_v58 = vld [vmem:[%s1702_s0 + $0xc0] sm:$0xf]  ;;  %v955_v59 = vld [vmem:[%s1702_s0 + $0xbc] sm:$0xf] }
  0x2d   :  { %v452_v60 = vld [vmem:[#allocation0 + $0xb0] ss:$2 sm:%s451_s9]   ;;  %78 = vst [vmem:[#allocation0 + $0x188] sm:$0xf] %v953_v57  ;;  %83 = vst [vmem:[#allocation0 + $0x180] sm:$0xf] %v954_v58 }
  0x2e   :  { %88 = vst [vmem:[#allocation0 + $0x178] sm:$0xf] %v955_v59  ;;  %s1303_s30 = smov 3  ;;  %s1305_s4 = smov 3  ;;  %v946_v61 = vld [vmem:[%s1702_s0 + $0xe0] sm:$0xf] }
  0x2f   :  { %v434_v62 = vld [vmem:[#allocation0 + $0x98] ss:$2 sm:%s433_s2]   ;;  %v446_v0 = vld [vmem:[#allocation0 + $0xa8] ss:$2 sm:%s445_s8]   ;;  %43 = vst [vmem:[#allocation0 + $0x1c0] sm:$0xf] %v946_v61 }
  0x30   :  { %v440_v63 = vld [vmem:[#allocation0 + $0xa0] ss:$2 sm:%s439_s3]   ;;  %1023 = vst.msk [vmem:[%s1703_s1 + $0x26] ss:$8 sm:$0x3] %vm322_vm0, %v452_v60   ;;  %s625_s19 = smov 3 }
  0x31   :  { %v416_v1 = vld [vmem:[#allocation0 + $0x80] ss:$2 sm:%s1239_s11]   ;;  %v428_v3 = vld [vmem:[#allocation0 + $0x90] ss:$2 sm:%s1263_s28]   ;;  %s631_s22 = smov 3  ;;  %s637_s23 = smov 3 }
  0x32   :  { %v422_v2 = vld [vmem:[#allocation0 + $0x88] ss:$2 sm:%s1261_s27]   ;;  %1020 = vst.msk [vmem:[%s1703_s1 + $0x23] ss:$8 sm:$0x3] %vm322_vm0, %v434_v62   ;;  %s643_s8 = smov 3 }
  0x33   :  { %1021 = vst.msk [vmem:[%s1703_s1 + $0x24] ss:$8 sm:$0x3] %vm322_vm0, %v440_v63   ;;  %1022 = vst.msk [vmem:[%s1703_s1 + $0x25] ss:$8 sm:$0x3] %vm322_vm0, %v446_v0  }
  0x34   :  { %1017 = vst.msk [vmem:[%s1703_s1 + $0x20] ss:$8 sm:$0x3] %vm322_vm0, %v416_v1   ;;  %1018 = vst.msk [vmem:[%s1703_s1 + $0x21] ss:$8 sm:$0x3] %vm322_vm0, %v422_v2  }
  0x35   :  { %1019 = vst.msk [vmem:[%s1703_s1 + $0x22] ss:$8 sm:$0x3] %vm322_vm0, %v428_v3   ;;  %v713_v4 = vld [vmem:[#allocation0 + $0x81] ss:$8 sm:$0xf]  }
  0x36   :  { %v715_v5 = vld [vmem:[#allocation0 + $0x81] ss:$8 sm:$0xf0]   ;;  %v458_v7 = vld [vmem:[#allocation0 + $0xb8] ss:$2 sm:%s1284_s16]   ;;  %s619_s16 = smov 3 }
  0x37   :  { %v717_v6 = vsel %vm706_vm1, %v715_v5, %v713_v4  ;;  %v987_v8 = vld [vmem:[%s1702_s0 + $0x3c] sm:$0xf]  ;;  %1024 = vst.msk [vmem:[%s1703_s1 + $0x27] ss:$8 sm:$0x3] %vm322_vm0, %v458_v7   ;;  %s649_s9 = smov 3 }
  0x38   :  { %718 = vrot.lane.b32.xlu0 %v717_v6, %s1081_s14  ;;  %v737_v9 = vld [vmem:[#allocation0 + $0x181] ss:$8 sm:$0xf0]   ;;  %248 = vst [vmem:[#allocation0 + $0x78] sm:$0xf] %v987_v8  ;;  %s1385_s17 = smov 3 }
  0x39   :  { %v620_v10 = vld [vmem:[#allocation0 + $0x190] ss:$2 sm:%s619_s16]   ;;  %v632_v12 = vld [vmem:[#allocation0 + $0x1a0] ss:$2 sm:%s631_s22]   ;;  %s1406_s22 = smov 3  ;;  %s1422_s3 = smov 3 }
  0x3a   :  { %v626_v11 = vld [vmem:[#allocation0 + $0x198] ss:$2 sm:%s625_s19]   ;;  %v614_v15 = vld [vmem:[#allocation0 + $0x188] ss:$2 sm:%s1305_s4]   ;;  %s1392_s19 = smov 3  ;;  %s1424_s11 = smov 3 }
  0x3b   :  { %v602_v13 = vld [vmem:[#allocation0 + $0x178] ss:$2 sm:%s1292_s24]   ;;  %1051 = vst.msk [vmem:[%s1703_s1 + $0x62] ss:$8 sm:$0x3] %vm322_vm0, %v620_v10   ;;  %s1430_s7 = smov 3 }
  0x3c   :  { %v608_v14 = vld [vmem:[#allocation0 + $0x180] ss:$2 sm:%s1303_s30]   ;;  %1052 = vst.msk [vmem:[%s1703_s1 + $0x63] ss:$8 sm:$0x3] %vm322_vm0, %v626_v11   ;;  %s409_s15 = smov 3 }
  0x3d   :  { %1053 = vst.msk [vmem:[%s1703_s1 + $0x64] ss:$8 sm:$0x3] %vm322_vm0, %v632_v12   ;;  %1048 = vst.msk [vmem:[%s1703_s1 + $0x57] ss:$8 sm:$0x3] %vm322_vm0, %v602_v13  }
  0x3e   :  { %1049 = vst.msk [vmem:[%s1703_s1 + $0x60] ss:$8 sm:$0x3] %vm322_vm0, %v608_v14   ;;  %1050 = vst.msk [vmem:[%s1703_s1 + $0x61] ss:$8 sm:$0x3] %vm322_vm0, %v614_v15  }
  0x3f   :  { %v638_v16 = vld [vmem:[#allocation0 + $0x1a8] ss:$2 sm:%s637_s23]   ;;  %v988_v17 = vld [vmem:[%s1702_s0 + $0x38] sm:$0xf]  ;;  %v993_v38 = vld [vmem:[%s1702_s0 + $0x24] sm:$0xf] }
  0x40   :  { %1054 = vst.msk [vmem:[%s1703_s1 + $0x65] ss:$8 sm:$0x3] %vm322_vm0, %v638_v16   ;;  %v735_v18 = vld [vmem:[#allocation0 + $0x181] ss:$8 sm:$0xf]  }
  0x41   :  { %v644_v19 = vld [vmem:[#allocation0 + $0x1b0] ss:$2 sm:%s643_s8]   ;;  %253 = vst [vmem:[#allocation0 + $0x70] sm:$0xf] %v988_v17  ;;  %v739_v20 = vsel %vm706_vm1, %v737_v9, %v735_v18  ;;  %v991_v35 = vld [vmem:[%s1702_s0 + $0x2c] sm:$0xf] }
  0x42   :  { %1055 = vst.msk [vmem:[%s1703_s1 + $0x66] ss:$8 sm:$0x3] %vm322_vm0, %v644_v19   ;;  %v650_v21 = vld [vmem:[#allocation0 + $0x1b8] ss:$2 sm:%s649_s9]   ;;  %740 = vrot.lane.b32.xlu1 %v739_v20, %s1081_s14  ;;  %s403_s8 = smov 3 }
  0x43   :  { %v746_v22 = vld [vmem:[#allocation0 + $0x3] ss:$8 sm:$0xf]   ;;  %1056 = vst.msk [vmem:[%s1703_s1 + $0x67] ss:$8 sm:$0x3] %vm322_vm0, %v650_v21  }
  0x44   :  { %v748_v23 = vld [vmem:[#allocation0 + $0x3] ss:$8 sm:$0xf0]   ;;  %v989_v33 = vld [vmem:[%s1702_s0 + $0x34] sm:$0xf]  ;;  %s1441_s20 = smov 3 }
  0x45   :  { %v757_v24 = vld [vmem:[#allocation0 + $0x83] ss:$8 sm:$0xf]   ;;  %v750_v25 = vsel %vm706_vm1, %v748_v23, %v746_v22  ;;  %258 = vst [vmem:[#allocation0 + $0x68] sm:$0xf] %v989_v33  ;;  %s1458_s5 = smov 3 }
  0x46   :  { %v759_v26 = vld [vmem:[#allocation0 + $0x83] ss:$8 sm:$0xf0]   ;;  %751 = vrot.lane.b32.xlu0 %v750_v25, %s1081_s14  ;;  %268 = vst [vmem:[#allocation0 + $0x58] sm:$0xf] %v991_v35  ;;  %s1460_s6 = smov 3 }
  0x47   :  { %v768_v27 = vld [vmem:[#allocation0 + $0x103] ss:$8 sm:$0xf]   ;;  %v761_v28 = vsel %vm706_vm1, %v759_v26, %v757_v24  ;;  %278 = vst [vmem:[#allocation0 + $0x48] sm:$0xf] %v993_v38  ;;  %s481_s9 = smov 3 }
  0x48   :  { %v770_v29 = vld [vmem:[#allocation0 + $0x103] ss:$8 sm:$0xf0]   ;;  %762 = vrot.lane.b32.xlu1 %v761_v28, %s1081_s14  ;;  %v973_v40 = vld [vmem:[%s1702_s0 + $0x74] sm:$0xf]  ;;  %s487_s10 = smov 3 }
  0x49   :  { %v779_v30 = vld [vmem:[#allocation0 + $0x183] ss:$8 sm:$0xf]   ;;  %v772_v31 = vsel %vm706_vm1, %v770_v29, %v768_v27  ;;  %v404_v42 = vld [vmem:[#allocation0 + $0x70] ss:$2 sm:%s403_s8]   ;;  %s499_s16 = smov 3 }
  0x4a   :  { %v781_v32 = vld [vmem:[#allocation0 + $0x183] ss:$8 sm:$0xf0]   ;;  %773 = vrot.lane.b32.xlu0 %v772_v31, %s1081_s14  ;;  %178 = vst [vmem:[#allocation0 + $0xe8] sm:$0xf] %v973_v40  ;;  %s565_s18 = smov 3 }
  0x4b   :  { %v990_v34 = vld [vmem:[%s1702_s0 + $0x30] sm:$0xf]  ;;  %v992_v36 = vld [vmem:[%s1702_s0 + $0x28] sm:$0xf]  ;;  %v783_v37 = vsel %vm706_vm1, %v781_v32, %v779_v30  ;;  %v972_v39 = vld [vmem:[%s1702_s0 + $0x78] sm:$0xf] }
  0x4c   :  { %263 = vst [vmem:[#allocation0 + $0x60] sm:$0xf] %v990_v34  ;;  %273 = vst [vmem:[#allocation0 + $0x50] sm:$0xf] %v992_v36  ;;  %v974_v41 = vld [vmem:[%s1702_s0 + $0x70] sm:$0xf]  ;;  %784 = vrot.lane.b32.xlu1 %v783_v37, %s1081_s14 }
  0x4d   :  { %173 = vst [vmem:[#allocation0 + $0xf0] sm:$0xf] %v972_v39  ;;  %183 = vst [vmem:[#allocation0 + $0xe0] sm:$0xf] %v974_v41  ;;  %v975_v43 = vld [vmem:[%s1702_s0 + $0x6c] sm:$0xf] }
  0x4e   :  { %1015 = vst.msk [vmem:[%s1703_s1 + $0x16] ss:$8 sm:$0x3] %vm322_vm0, %v404_v42   ;;  %v410_v44 = vld [vmem:[#allocation0 + $0x78] ss:$2 sm:%s409_s15]   ;;  %s655_s26 = smov 3 }
  0x4f   :  { %188 = vst [vmem:[#allocation0 + $0xd8] sm:$0xf] %v975_v43  ;;  %v976_v45 = vld [vmem:[%s1702_s0 + $0x68] sm:$0xf]  ;;  %v977_v46 = vld [vmem:[%s1702_s0 + $0x64] sm:$0xf] }
  0x50   :  { %1016 = vst.msk [vmem:[%s1703_s1 + $0x17] ss:$8 sm:$0x3] %vm322_vm0, %v410_v44   ;;  %193 = vst [vmem:[#allocation0 + $0xd0] sm:$0xf] %v976_v45  ;;  %s661_s24 = smov 3 }
  0x51   :  { %198 = vst [vmem:[#allocation0 + $0xc8] sm:$0xf] %v977_v46  ;;  %v956_v47 = vld [vmem:[%s1702_s0 + $0xb8] sm:$0xf]  ;;  %v957_v48 = vld [vmem:[%s1702_s0 + $0xb4] sm:$0xf] }
  0x52   :  { %93 = vst [vmem:[#allocation0 + $0x170] sm:$0xf] %v956_v47  ;;  %98 = vst [vmem:[#allocation0 + $0x168] sm:$0xf] %v957_v48  ;;  %v958_v49 = vld [vmem:[%s1702_s0 + $0xb0] sm:$0xf] }
  0x53   :  { %v959_v50 = vld [vmem:[%s1702_s0 + $0xac] sm:$0xf]  ;;  %103 = vst [vmem:[#allocation0 + $0x160] sm:$0xf] %v958_v49  ;;  %v960_v52 = vld [vmem:[%s1702_s0 + $0xa8] sm:$0xf] }
  0x54   :  { %v398_v51 = vld [vmem:[#allocation0 + $0x68] ss:$2 sm:%s1430_s7]   ;;  %s493_s7 = smov 3  ;;  %108 = vst [vmem:[#allocation0 + $0x158] sm:$0xf] %v959_v50  ;;  %s667_s29 = smov 3 }
  0x55   :  { %v380_v53 = vld [vmem:[#allocation0 + $0x50] ss:$2 sm:%s1406_s22]   ;;  %v392_v55 = vld [vmem:[#allocation0 + $0x60] ss:$2 sm:%s1424_s11]   ;;  %113 = vst [vmem:[#allocation0 + $0x150] sm:$0xf] %v960_v52 }
  0x56   :  { %v386_v54 = vld [vmem:[#allocation0 + $0x58] ss:$2 sm:%s1422_s3]   ;;  %1014 = vst.msk [vmem:[%s1703_s1 + $0x15] ss:$8 sm:$0x3] %vm322_vm0, %v398_v51   ;;  %s583_s22 = smov 3 }
  0x57   :  { %v368_v56 = vld [vmem:[#allocation0 + $0x40] ss:$2 sm:%s1385_s17]   ;;  %1011 = vst.msk [vmem:[%s1703_s1 + $0x12] ss:$8 sm:$0x3] %vm322_vm0, %v380_v53   ;;  %s589_s3 = smov 3 }
  0x58   :  { %v374_v57 = vld [vmem:[#allocation0 + $0x48] ss:$2 sm:%s1392_s19]   ;;  %1012 = vst.msk [vmem:[%s1703_s1 + $0x13] ss:$8 sm:$0x3] %vm322_vm0, %v386_v54   ;;  %s595_s11 = smov 3 }
  0x59   :  { %1013 = vst.msk [vmem:[%s1703_s1 + $0x14] ss:$8 sm:$0x3] %vm322_vm0, %v392_v55   ;;  %v500_v58 = vld [vmem:[#allocation0 + $0xf0] ss:$2 sm:%s499_s16]   ;;  %s577_s16 = smov 3 }
  0x5a   :  { %1009 = vst.msk [vmem:[%s1703_s1 + $0x10] ss:$8 sm:$0x3] %vm322_vm0, %v368_v56   ;;  %1010 = vst.msk [vmem:[%s1703_s1 + $0x11] ss:$8 sm:$0x3] %vm322_vm0, %v374_v57  }
  0x5b   :  { %v790_v59 = vld [vmem:[#allocation0 + $0x41] ss:$8 sm:$0xf]   ;;  %1031 = vst.msk [vmem:[%s1703_s1 + $0x36] ss:$8 sm:$0x3] %vm322_vm0, %v500_v58  }
  0x5c   :  { %v792_v60 = vld [vmem:[#allocation0 + $0x41] ss:$8 sm:$0xf0]   ;;  %v482_v62 = vld [vmem:[#allocation0 + $0xd8] ss:$2 sm:%s481_s9]   ;;  %s673_s30 = smov 3 }
  0x5d   :  { %v794_v61 = vsel %vm706_vm1, %v792_v60, %v790_v59  ;;  %v488_v63 = vld [vmem:[#allocation0 + $0xe0] ss:$2 sm:%s487_s10]   ;;  %v476_v3 = vld [vmem:[#allocation0 + $0xd0] ss:$2 sm:%s1460_s6]   ;;  %s679_s4 = smov 3  ;;  %s685_s2 = smov 3 }
  0x5e   :  { %v494_v0 = vld [vmem:[#allocation0 + $0xe8] ss:$2 sm:%s493_s7]   ;;  %795 = vrot.lane.b32.xlu0 %v794_v61, %s1081_s14  ;;  %1028 = vst.msk [vmem:[%s1703_s1 + $0x33] ss:$8 sm:$0x3] %vm322_vm0, %v482_v62   ;;  %s571_s7 = smov 3 }
  0x5f   :  { %v464_v1 = vld [vmem:[#allocation0 + $0xc0] ss:$2 sm:%s1441_s20]   ;;  %1029 = vst.msk [vmem:[%s1703_s1 + $0x34] ss:$8 sm:$0x3] %vm322_vm0, %v488_v63   ;;  %s691_s12 = smov 3 }
  0x60   :  { %v470_v2 = vld [vmem:[#allocation0 + $0xc8] ss:$2 sm:%s1458_s5]   ;;  %1030 = vst.msk [vmem:[%s1703_s1 + $0x35] ss:$8 sm:$0x3] %vm322_vm0, %v494_v0   ;;  %s697_s13 = smov 3 }
  0x61   :  { %1025 = vst.msk [vmem:[%s1703_s1 + $0x30] ss:$8 sm:$0x3] %vm322_vm0, %v464_v1   ;;  %1026 = vst.msk [vmem:[%s1703_s1 + $0x31] ss:$8 sm:$0x3] %vm322_vm0, %v470_v2  }
  0x62   :  { %1027 = vst.msk [vmem:[%s1703_s1 + $0x32] ss:$8 sm:$0x3] %vm322_vm0, %v476_v3   ;;  %v801_v4 = vld [vmem:[#allocation0 + $0xc1] ss:$8 sm:$0xf]  }
  0x63   :  { %v803_v5 = vld [vmem:[#allocation0 + $0xc1] ss:$8 sm:$0xf0]   ;;  %v961_v7 = vld [vmem:[%s1702_s0 + $0xa4] sm:$0xf] }
  0x64   :  { %v805_v6 = vsel %vm706_vm1, %v803_v5, %v801_v4  ;;  %v939_v8 = vld [vmem:[%s1702_s0 + $0xfc] sm:$0xf]  ;;  %118 = vst [vmem:[#allocation0 + $0x148] sm:$0xf] %v961_v7  ;;  %v584_v9 = vld [vmem:[#allocation0 + $0x160] ss:$2 sm:%s583_s22]  }
  0x65   :  { %806 = vrot.lane.b32.xlu1 %v805_v6, %s1081_s14  ;;  %v590_v10 = vld [vmem:[#allocation0 + $0x168] ss:$2 sm:%s589_s3]   ;;  %8 = vst [vmem:[#allocation0 + $0x1f8] sm:$0xf] %v939_v8  ;;  %v940_v12 = vld [vmem:[%s1702_s0 + $0xf8] sm:$0xf] }
  0x66   :  { %1045 = vst.msk [vmem:[%s1703_s1 + $0x54] ss:$8 sm:$0x3] %vm322_vm0, %v584_v9   ;;  %1046 = vst.msk [vmem:[%s1703_s1 + $0x55] ss:$8 sm:$0x3] %vm322_vm0, %v590_v10  }
  0x67   :  { %v596_v11 = vld [vmem:[#allocation0 + $0x170] ss:$2 sm:%s595_s11]   ;;  %13 = vst [vmem:[#allocation0 + $0x1f0] sm:$0xf] %v940_v12  ;;  %v943_v15 = vld [vmem:[%s1702_s0 + $0xec] sm:$0xf] }
  0x68   :  { %1047 = vst.msk [vmem:[%s1703_s1 + $0x56] ss:$8 sm:$0x3] %vm322_vm0, %v596_v11   ;;  %v941_v13 = vld [vmem:[%s1702_s0 + $0xf4] sm:$0xf] }
  0x69   :  { %v942_v14 = vld [vmem:[%s1702_s0 + $0xf0] sm:$0xf]  ;;  %18 = vst [vmem:[#allocation0 + $0x1e8] sm:$0xf] %v941_v13  ;;  %v944_v16 = vld [vmem:[%s1702_s0 + $0xe8] sm:$0xf] }
  0x6a   :  { %23 = vst [vmem:[#allocation0 + $0x1e0] sm:$0xf] %v942_v14  ;;  %v945_v17 = vld [vmem:[%s1702_s0 + $0xe4] sm:$0xf]  ;;  %28 = vst [vmem:[#allocation0 + $0x1d8] sm:$0xf] %v943_v15 }
  0x6b   :  { %v814_v18 = vld [vmem:[#allocation0 + $0x141] ss:$8 sm:$0xf0]   ;;  %33 = vst [vmem:[#allocation0 + $0x1d0] sm:$0xf] %v944_v16  ;;  %s559_s0 = smov 3 }
  0x6c   :  { %38 = vst [vmem:[#allocation0 + $0x1c8] sm:$0xf] %v945_v17  ;;  %v834_v19 = vld [vmem:[#allocation0 + $0x43] ss:$8 sm:$0xf]  }
  0x6d   :  { %v836_v20 = vld [vmem:[#allocation0 + $0x43] ss:$8 sm:$0xf0]   ;;  %v812_v21 = vld [vmem:[#allocation0 + $0x141] ss:$8 sm:$0xf]  }
  0x6e   :  { %v560_v22 = vld [vmem:[#allocation0 + $0x140] ss:$2 sm:%s559_s0]   ;;  %v816_v23 = vsel %vm706_vm1, %v814_v18, %v812_v21  ;;  %v572_v25 = vld [vmem:[#allocation0 + $0x150] ss:$2 sm:%s571_s7]   ;;  %v838_v32 = vsel %vm706_vm1, %v836_v20, %v834_v19 }
  0x6f   :  { %1041 = vst.msk [vmem:[%s1703_s1 + $0x50] ss:$8 sm:$0x3] %vm322_vm0, %v560_v22   ;;  %v566_v24 = vld [vmem:[#allocation0 + $0x148] ss:$2 sm:%s565_s18]   ;;  %817 = vrot.lane.b32.xlu0 %v816_v23, %s1081_s14 }
  0x70   :  { %v578_v26 = vld [vmem:[#allocation0 + $0x158] ss:$2 sm:%s577_s16]   ;;  %v845_v27 = vld [vmem:[#allocation0 + $0xc3] ss:$8 sm:$0xf]  }
  0x71   :  { %v847_v28 = vld [vmem:[#allocation0 + $0xc3] ss:$8 sm:$0xf0]   ;;  %1042 = vst.msk [vmem:[%s1703_s1 + $0x51] ss:$8 sm:$0x3] %vm322_vm0, %v566_v24  }
  0x72   :  { %1043 = vst.msk [vmem:[%s1703_s1 + $0x52] ss:$8 sm:$0x3] %vm322_vm0, %v572_v25   ;;  %1044 = vst.msk [vmem:[%s1703_s1 + $0x53] ss:$8 sm:$0x3] %vm322_vm0, %v578_v26   ;;  %v849_v41 = vsel %vm706_vm1, %v847_v28, %v845_v27 }
  0x73   :  { %v856_v29 = vld [vmem:[#allocation0 + $0x143] ss:$8 sm:$0xf]   ;;  %v825_v31 = vld [vmem:[#allocation0 + $0x1c1] ss:$8 sm:$0xf0]   ;;  %839 = vrot.lane.b32.xlu0 %v838_v32, %s1081_s14 }
  0x74   :  { %v858_v30 = vld [vmem:[#allocation0 + $0x143] ss:$8 sm:$0xf0]   ;;  %v823_v33 = vld [vmem:[#allocation0 + $0x1c1] ss:$8 sm:$0xf]  }
  0x75   :  { %v656_v34 = vld [vmem:[#allocation0 + $0x1c0] ss:$2 sm:%s655_s26]   ;;  %v827_v35 = vsel %vm706_vm1, %v825_v31, %v823_v33  ;;  %v668_v37 = vld [vmem:[#allocation0 + $0x1d0] ss:$2 sm:%s667_s29]   ;;  %v860_v42 = vsel %vm706_vm1, %v858_v30, %v856_v29 }
  0x76   :  { %1057 = vst.msk [vmem:[%s1703_s1 + $0x70] ss:$8 sm:$0x3] %vm322_vm0, %v656_v34   ;;  %v662_v36 = vld [vmem:[#allocation0 + $0x1c8] ss:$2 sm:%s661_s24]   ;;  %828 = vrot.lane.b32.xlu1 %v827_v35, %s1081_s14 }
  0x77   :  { %v674_v38 = vld [vmem:[#allocation0 + $0x1d8] ss:$2 sm:%s673_s30]   ;;  %1058 = vst.msk [vmem:[%s1703_s1 + $0x71] ss:$8 sm:$0x3] %vm322_vm0, %v662_v36   ;;  %861 = vrot.lane.b32.xlu0 %v860_v42, %s1081_s14 }
  0x78   :  { %1059 = vst.msk [vmem:[%s1703_s1 + $0x72] ss:$8 sm:$0x3] %vm322_vm0, %v668_v37   ;;  %1060 = vst.msk [vmem:[%s1703_s1 + $0x73] ss:$8 sm:$0x3] %vm322_vm0, %v674_v38  }
  0x79   :  { %v680_v39 = vld [vmem:[#allocation0 + $0x1e0] ss:$2 sm:%s679_s4]   ;;  %v867_v43 = vld [vmem:[#allocation0 + $0x1c3] ss:$8 sm:$0xf]  }
  0x7a   :  { %v686_v40 = vld [vmem:[#allocation0 + $0x1e8] ss:$2 sm:%s685_s2]   ;;  %1061 = vst.msk [vmem:[%s1703_s1 + $0x74] ss:$8 sm:$0x3] %vm322_vm0, %v680_v39   ;;  %850 = vrot.lane.b32.xlu1 %v849_v41, %s1081_s14 }
  0x7b   :  { %1062 = vst.msk [vmem:[%s1703_s1 + $0x75] ss:$8 sm:$0x3] %vm322_vm0, %v686_v40   ;;  %v869_v44 = vld [vmem:[#allocation0 + $0x1c3] ss:$8 sm:$0xf0]  }
  0x7c   :  { %v692_v45 = vld [vmem:[#allocation0 + $0x1f0] ss:$2 sm:%s691_s12]   ;;  %v871_v47 = vsel %vm706_vm1, %v869_v44, %v867_v43 }
  0x7d   :  { %v698_v46 = vld [vmem:[#allocation0 + $0x1f8] ss:$2 sm:%s697_s13]   ;;  %1063 = vst.msk [vmem:[%s1703_s1 + $0x76] ss:$8 sm:$0x3] %vm322_vm0, %v692_v45  }
  0x7e   :  { %1064 = vst.msk [vmem:[%s1703_s1 + $0x77] ss:$8 sm:$0x3] %vm322_vm0, %v698_v46   ;;  %872 = vrot.lane.b32.xlu1 %v871_v47, %s1081_s14 }
  0x8a   :  { %v709_v48 = vpop.permute.xlu0 %708  }
  0x8b   :  { %711 = vst.msk [vmem:[%s1703_s1] sm:$0xff] %vm710_vm2, %v709_v48  }
  0x94   :  { %v730_v49 = vpop.permute.xlu1 %729  }
  0x95   :  { %1066 = vst.msk [vmem:[%s1703_s1 + $0x40] sm:$0xff] %vm710_vm2, %v730_v49  }
  0xaa   :  { %v719_v50 = vpop.permute.xlu0 %718  }
  0xab   :  { %1065 = vst.msk [vmem:[%s1703_s1 + $0x20] sm:$0xff] %vm710_vm2, %v719_v50  }
  0xb4   :  { %v741_v51 = vpop.permute.xlu1 %740  }
  0xb5   :  { %1067 = vst.msk [vmem:[%s1703_s1 + $0x60] sm:$0xff] %vm710_vm2, %v741_v51  }
  0xb8   :  { %v752_v52 = vpop.permute.xlu0 %751  }
  0xb9   :  { %1068 = vst.msk [vmem:[%s1703_s1 + $0x8] sm:$0xff] %vm710_vm2, %v752_v52  }
  0xba   :  { %v763_v53 = vpop.permute.xlu1 %762  }
  0xbb   :  { %1069 = vst.msk [vmem:[%s1703_s1 + $0x28] sm:$0xff] %vm710_vm2, %v763_v53  }
  0xbc   :  { %v774_v54 = vpop.permute.xlu0 %773  }
  0xbd   :  { %1070 = vst.msk [vmem:[%s1703_s1 + $0x48] sm:$0xff] %vm710_vm2, %v774_v54  }
  0xbe   :  { %v785_v55 = vpop.permute.xlu1 %784  }
  0xbf   :  { %1071 = vst.msk [vmem:[%s1703_s1 + $0x68] sm:$0xff] %vm710_vm2, %v785_v55  }
  0xd0   :  { %v796_v56 = vpop.permute.xlu0 %795  }
  0xd1   :  { %1072 = vst.msk [vmem:[%s1703_s1 + $0x10] sm:$0xff] %vm710_vm2, %v796_v56  }
  0xd7   :  { %v807_v57 = vpop.permute.xlu1 %806  }
  0xd8   :  { %1073 = vst.msk [vmem:[%s1703_s1 + $0x30] sm:$0xff] %vm710_vm2, %v807_v57  }
  0xe1   :  { %v818_v58 = vpop.permute.xlu0 %817  }
  0xe2   :  { %1074 = vst.msk [vmem:[%s1703_s1 + $0x50] sm:$0xff] %vm710_vm2, %v818_v58  }
  0xe5   :  { %v840_v60 = vpop.permute.xlu0 %839  }
  0xe6   :  { %1076 = vst.msk [vmem:[%s1703_s1 + $0x18] sm:$0xff] %vm710_vm2, %v840_v60  }
  0xe8   :  { %v829_v59 = vpop.permute.xlu1 %828  }
  0xe9   :  { %1075 = vst.msk [vmem:[%s1703_s1 + $0x70] sm:$0xff] %vm710_vm2, %v829_v59   ;;  %v862_v62 = vpop.permute.xlu0 %861  }
  0xea   :  { %1078 = vst.msk [vmem:[%s1703_s1 + $0x58] sm:$0xff] %vm710_vm2, %v862_v62  }
  0xec   :  { %v851_v61 = vpop.permute.xlu1 %850  }
  0xed   :  { %1077 = vst.msk [vmem:[%s1703_s1 + $0x38] sm:$0xff] %vm710_vm2, %v851_v61  }
  0xf0   :  { %v873_v63 = vpop.permute.xlu1 %872  }
  0xf1   :  { %1079 = vst.msk [vmem:[%s1703_s1 + $0x78] sm:$0xff] %vm710_vm2, %v873_v63  }

// kernel: efficient_gat_conv.1
= control target key start
LH: loop header
LB: loop body
LE: loop exit
PB: predicated region body
PF: predicated region fallthrough
CT: control target
= control target key end

     0   :  { %vm33_vm0 = vcmask 130048   ;;  %v1766_v17 = vmov 6   ;;  %v1767_v18 = vmov 5   ;;  %vm167_vm1 = vcmask 261120   ;;  %s2485_s1 = inlined_call_operand.vmem [shape: f32[16,64], index: 1, kind: input, shape index: {}]   ;;  %s2486_s0 = inlined_call_operand.vmem [shape: f32[64,16], index: 0, kind: input, shape index: {}]   ;;  %s2487_s2 = inlined_call_operand.vmem [shape: f32[32,8], index: 2, kind: input, shape index: {}]   ;;  %s2488_s5 = inlined_call_operand.vmem [shape: f32[256,32], index: 5, kind: input, shape index: {}]   ;;  %s2489_s4 = inlined_call_operand.vmem [shape: f32[256,4], index: 4, kind: input, shape index: {}]   ;;  %s2490_s3 = inlined_call_operand.vmem [shape: f32[64,256], index: 3, kind: input, shape index: {}]   ;;  %s2491_s6 = inlined_call_operand.vmem [shape: f32[16,128], index: 6, kind: output, shape index: {}]  }
   0x1   :  { %v31_v0 = vld [vmem:[%s2485_s1] sm:$0xff]  ;;  %v32_v1 = vld [vmem:[%s2485_s1 + $0x8] sm:$0xff]  ;;  %v165_v8 = vld [vmem:[%s2487_s2 + $0x10] sm:$0xff]  ;;  %1655 = vset.pattern.permute.xlu0 %v1766_v17  ;;  %1653 = vset.pattern.permute.xlu1 %v1767_v18  ;;  %vm577_vm2 = vcmask 523264  }
   0x2   :  { %v23_v2 = vld [vmem:[%s2486_s0] sm:$0xff]  ;;  %v1565_v3 = vpack.c.bf16 %v32_v1, %v31_v0  ;;  %v164_v5 = vld [vmem:[%s2487_s2 + $0x8] sm:$0xff]  ;;  %v166_v9 = vld [vmem:[%s2487_s2 + $0x18] sm:$0xff] }
   0x3   :  { %1533 = vmatprep.mubr.msk.f32.mxu0 %vm33_vm0, %v23_v2  ;;  %v163_v4 = vld [vmem:[%s2487_s2] sm:$0xff]  ;;  %v24_v6 = vld [vmem:[%s2486_s0 + $0x8] sm:$0xff]  ;;  %v25_v10 = vld [vmem:[%s2486_s0 + $0x10] sm:$0xff]  ;;  %v1573_v11 = vpack.c.bf16 %v166_v9, %v165_v8 }
   0x4   :  { %1566 = vmatprep.subr.bf16.mxu0 %v1565_v3  ;;  %v1569_v7 = vpack.c.bf16 %v164_v5, %v163_v4  ;;  %v26_v12 = vld [vmem:[%s2486_s0 + $0x18] sm:$0xff]  ;;  %v27_v13 = vld [vmem:[%s2486_s0 + $0x20] sm:$0xff]  ;;  %v28_v14 = vld [vmem:[%s2486_s0 + $0x28] sm:$0xff] }
   0x5   :  { %1568 = vmatpush3.bf16.msra.mxu0 %v1565_v3  ;;  %v29_v15 = vld [vmem:[%s2486_s0 + $0x30] sm:$0xff]  ;;  %v30_v16 = vld [vmem:[%s2486_s0 + $0x38] sm:$0xff]  ;;  %v932_v19 = vld [vmem:[%s2488_s5 + $0x88] sm:$0xff] }
   0x6   :  { %1570 = vmatprep.subr.bf16.mxu1 %v1569_v7  ;;  %v916_v20 = vld [vmem:[%s2488_s5 + $0x8] sm:$0xff]  ;;  %v931_v21 = vld [vmem:[%s2488_s5 + $0x80] sm:$0xff]  ;;  %v934_v31 = vld [vmem:[%s2488_s5 + $0x98] sm:$0xff] }
   0x7   :  { %1572 = vmatpush3.bf16.msra.mxu1 %v1569_v7  ;;  %v940_v22 = vld [vmem:[%s2488_s5 + $0xc8] sm:$0xff]  ;;  %v915_v24 = vld [vmem:[%s2488_s5] sm:$0xff]  ;;  %v918_v36 = vld [vmem:[%s2488_s5 + $0x18] sm:$0xff] }
   0x8   :  { %1534 = vmatmul.mubr.msk.f32.vlgmr.msra.gmra.mrb[0].mxu0 %vm33_vm0, %v24_v6  ;;  %1574 = vmatprep.subr.bf16.mxu1 %v1573_v11  ;;  %v924_v23 = vld [vmem:[%s2488_s5 + $0x48] sm:$0xff]  ;;  %v939_v25 = vld [vmem:[%s2488_s5 + $0xc0] sm:$0xff]  ;;  %v942_v39 = vld [vmem:[%s2488_s5 + $0xd8] sm:$0xff] }
   0x9   :  { %1536 = vmatprep.mubr.msk.f32.mxu0 %vm33_vm0, %v25_v10  ;;  %v923_v26 = vld [vmem:[%s2488_s5 + $0x40] sm:$0xff]  ;;  %v926_v40 = vld [vmem:[%s2488_s5 + $0x58] sm:$0xff]  ;;  %v933_v41 = vld [vmem:[%s2488_s5 + $0x90] sm:$0xff] }
   0xa   :  { %v917_v42 = vld [vmem:[%s2488_s5 + $0x10] sm:$0xff]  ;;  %v936_v57 = vld [vmem:[%s2488_s5 + $0xa8] sm:$0xff]  ;;  %v935_v61 = vld [vmem:[%s2488_s5 + $0xa0] sm:$0xff] }
   0xb   :  { %1576 = vmatpush3.bf16.msra.mxu1 %v1573_v11  ;;  %v941_v43 = vld [vmem:[%s2488_s5 + $0xd0] sm:$0xff]  ;;  %v920_v58 = vld [vmem:[%s2488_s5 + $0x28] sm:$0xff]  ;;  %v919_v62 = vld [vmem:[%s2488_s5 + $0x20] sm:$0xff] }
   0xc   :  { %1537 = vmatmul.mubr.msk.f32.gmra.mrb[2].mxu0 %vm33_vm0, %v26_v12  ;;  %v925_v49 = vld [vmem:[%s2488_s5 + $0x50] sm:$0xff]  ;;  %v944_v60 = vld [vmem:[%s2488_s5 + $0xe8] sm:$0xff]  ;;  %v943_v0 = vld [vmem:[%s2488_s5 + $0xe0] sm:$0xff] }
   0xd   :  { %1539 = vmatprep.mubr.msk.f32.mxu0 %vm33_vm0, %v27_v13  ;;  %v927_v5 = vld [vmem:[%s2488_s5 + $0x60] sm:$0xff]  ;;  %v928_v6 = vld [vmem:[%s2488_s5 + $0x68] sm:$0xff] }
  0x10   :  { %1540 = vmatmul.mubr.msk.f32.gmra.mrb[4].mxu0 %vm33_vm0, %v28_v14  ;;  %v938_v14 = vld [vmem:[%s2488_s5 + $0xb8] sm:$0xff] }
  0x11   :  { %1542 = vmatprep.mubr.msk.f32.mxu0 %vm33_vm0, %v29_v15  ;;  %v922_v15 = vld [vmem:[%s2488_s5 + $0x38] sm:$0xff] }
  0x14   :  { %1543 = vmatmul.mubr.msk.f32.gmra.mrb[6].mxu0 %vm33_vm0, %v30_v16 }
  0xdb   :  { %v1888_v27 = vpop.f32.mrb[0].mxu0 }
  0xdc   :  { %v1890_v28 = vpop.f32.mrb[1].mxu0  ;;  %v964_v29 = vmul.f32 %v1888_v27, %v932_v19  ;;  %v948_v30 = vmul.f32 %v1888_v27, %v916_v20  ;;  %v1898_v32 = vmul.f32 %v1888_v27, %v940_v22  ;;  %v1901_v33 = vmul.f32 %v1888_v27, %v924_v23  ;;  %v946_v19 = vld [vmem:[%s2488_s5 + $0xf8] sm:$0xff]  ;;  %v937_v20 = vld [vmem:[%s2488_s5 + $0xb0] sm:$0xff] }
  0xdd   :  { %1553 = vmatprep.mubr.msk.f32.mxu1 %vm167_vm1, %v1890_v28  ;;  %v963_v34 = vmul.f32 %v931_v21, %v1890_v28  ;;  %v947_v35 = vmul.f32 %v915_v24, %v1890_v28  ;;  %v1911_v37 = vmul.f32 %v939_v25, %v1890_v28  ;;  %v1914_v38 = vmul.f32 %v923_v26, %v1890_v28  ;;  %v921_v21 = vld [vmem:[%s2488_s5 + $0x30] sm:$0xff] }
  0xde   :  { %1554 = vmatmul.mubr.msk.f32.vlgmr.msra.gmra.mrb[0].mxu1 %vm167_vm1, %v1888_v27  ;;  %v945_v24 = vld [vmem:[%s2488_s5 + $0xf0] sm:$0xff] }
  0xdf   :  { %v1933_v44 = vpop.f32.mrb[2].mxu0  ;;  %v1609_v45 = vpack.c.bf16 %v964_v29, %v963_v34  ;;  %v1611_v46 = vpack.c.bf16 %v948_v30, %v947_v35  ;;  %v1625_v47 = vpack.c.bf16 %v1898_v32, %v1911_v37  ;;  %v1627_v48 = vpack.c.bf16 %v1901_v33, %v1914_v38  ;;  %v930_v34 = vld [vmem:[%s2488_s5 + $0x78] sm:$0xff] }
  0xe0   :  { %v1942_v50 = vpop.f32.mrb[3].mxu0  ;;  %v966_v51 = vmul.f32 %v1933_v44, %v934_v31  ;;  %v950_v52 = vmul.f32 %v1933_v44, %v918_v36  ;;  %v1947_v53 = vmul.f32 %v1933_v44, %v942_v39  ;;  %v1950_v54 = vmul.f32 %v1933_v44, %v926_v40  ;;  %v929_v31 = vld [vmem:[%s2488_s5 + $0x70] sm:$0xff]  ;;  %s1770_s5 = smov 64  }
  0xe1   :  { %1610 = vmatprep.subr.bf16.mxu1 %v1609_v45  ;;  %1556 = vmatprep.mubr.msk.f32.mxu1 %vm167_vm1, %v1942_v50  ;;  %v965_v55 = vmul.f32 %v933_v41, %v1942_v50  ;;  %v949_v56 = vmul.f32 %v917_v42, %v1942_v50  ;;  %v973_v59 = vmul.f32 %v941_v43, %v1942_v50 }
  0xe2   :  { %1612 = vmatpush3.bf16.msra.mxu1 %v1611_v46  ;;  %v957_v63 = vmul.f32 %v925_v49, %v1942_v50 }
  0xe3   :  { %v1976_v1 = vpop.f32.mrb[4].mxu0  ;;  %1557 = vmatmul.mubr.msk.f32.gmra.mrb[2].mxu1 %vm167_vm1, %v1933_v44  ;;  %v1613_v2 = vpack.c.bf16 %v966_v51, %v965_v55  ;;  %v1615_v3 = vpack.c.bf16 %v950_v52, %v949_v56  ;;  %v1629_v4 = vpack.c.bf16 %v1947_v53, %v973_v59 }
  0xe4   :  { %v1987_v7 = vpop.f32.mrb[5].mxu0  ;;  %v968_v8 = vmul.f32 %v1976_v1, %v936_v57  ;;  %v952_v9 = vmul.f32 %v1976_v1, %v920_v58  ;;  %v1631_v10 = vpack.c.bf16 %v1950_v54, %v957_v63  ;;  %v976_v11 = vmul.f32 %v1976_v1, %v944_v60 }
  0xe5   :  { %1614 = vmatprep.subr.bf16.mxu1 %v1613_v2  ;;  %v967_v12 = vmul.f32 %v935_v61, %v1987_v7  ;;  %v951_v13 = vmul.f32 %v919_v62, %v1987_v7  ;;  %1559 = vmatprep.mubr.msk.f32.mxu1 %vm167_vm1, %v1987_v7  ;;  %v975_v16 = vmul.f32 %v943_v0, %v1987_v7  ;;  %v1768_v57 = vmov 7  }
  0xe6   :  { %1616 = vmatpush3.bf16.msra.mxu1 %v1615_v3  ;;  %v959_v22 = vmul.f32 %v927_v5, %v1987_v7  ;;  %v960_v23 = vmul.f32 %v1976_v1, %v928_v6  ;;  %v1769_v58 = vmov 4  }
  0xe7   :  { %v2018_v25 = vpop.f32.mrb[6].mxu0  ;;  %v1617_v26 = vpack.c.bf16 %v968_v8, %v967_v12  ;;  %v1619_v29 = vpack.c.bf16 %v952_v9, %v951_v13  ;;  %1560 = vmatmul.mubr.msk.f32.gmra.mrb[4].mxu1 %vm167_vm1, %v1976_v1  ;;  %v1633_v30 = vpack.c.bf16 %v976_v11, %v975_v16 }
  0xe8   :  { %v2028_v35 = vpop.f32.mrb[7].mxu0  ;;  %v970_v36 = vmul.f32 %v2018_v25, %v938_v14  ;;  %v954_v39 = vmul.f32 %v2018_v25, %v922_v15  ;;  %v1635_v40 = vpack.c.bf16 %v960_v23, %v959_v22  ;;  %v978_v41 = vmul.f32 %v2018_v25, %v946_v19 }
  0xe9   :  { %1618 = vmatprep.subr.bf16.mxu1 %v1617_v26  ;;  %v969_v42 = vmul.f32 %v937_v20, %v2028_v35  ;;  %v953_v43 = vmul.f32 %v921_v21, %v2028_v35  ;;  %1562 = vmatprep.mubr.msk.f32.mxu1 %vm167_vm1, %v2028_v35  ;;  %v977_v45 = vmul.f32 %v945_v24, %v2028_v35 }
  0xea   :  { %1620 = vmatpush3.bf16.msra.mxu1 %v1619_v29  ;;  %v961_v46 = vmul.f32 %v929_v31, %v2028_v35  ;;  %v962_v49 = vmul.f32 %v2018_v25, %v930_v34 }
  0xeb   :  { %v1621_v51 = vpack.c.bf16 %v970_v36, %v969_v42  ;;  %v1623_v52 = vpack.c.bf16 %v954_v39, %v953_v43  ;;  %1563 = vmatmul.mubr.msk.f32.gmra.mrb[6].mxu1 %vm167_vm1, %v2018_v25  ;;  %v1637_v53 = vpack.c.bf16 %v978_v41, %v977_v45 }
  0xec   :  { %v1639_v54 = vpack.c.bf16 %v962_v49, %v961_v46 }
  0xed   :  { %1622 = vmatprep.subr.bf16.mxu1 %v1621_v51 }
  0xee   :  { %1624 = vmatpush3.bf16.msra.mxu1 %v1623_v52 }
  0xef   :  { %1626 = vmatprep.subr.bf16.mxu1 %v1625_v47 }
  0xf2   :  { %1628 = vmatpush3.bf16.msra.mxu1 %v1627_v48 }
  0xf3   :  { %1630 = vmatprep.subr.bf16.mxu1 %v1629_v4 }
  0xf6   :  { %1632 = vmatpush3.bf16.msra.mxu1 %v1631_v10 }
  0xf7   :  { %1634 = vmatprep.subr.bf16.mxu1 %v1633_v30 }
  0xfa   :  { %1636 = vmatpush3.bf16.msra.mxu1 %v1635_v40 }
  0xfb   :  { %1638 = vmatprep.subr.bf16.mxu1 %v1637_v53 }
  0xfe   :  { %1640 = vmatpush3.bf16.msra.mxu1 %v1639_v54 }
 0x1b1   :  { %v1555_v55 = vpop.f32.mrb[0].mxu1 }
 0x1b2   :  { %430 = vperm.xlu0 %1655, %v1555_v55   ;;  %386 = vperm.xlu1 %1653, %v1555_v55   ;;  %v258_v56 = vpop.f32.mrb[1].mxu1 }
 0x1b6   :  { %1656 = vset.pattern.permute.xlu0 %v1767_v18  ;;  %1654 = vset.pattern.permute.xlu1 %v1768_v57  ;;  %v1558_v32 = vpop.f32.mrb[2].mxu1 }
 0x1b7   :  { %474 = vperm.xlu1 %1654, %v1555_v55   ;;  %382 = vperm.xlu0 %1656, %v258_v56   ;;  %v268_v37 = vpop.f32.mrb[3].mxu1 }
 0x1ba   :  { %v2049_v33 = vpop.f32.mrb[4].mxu1 }
 0x1bb   :  { %1659 = vset.pattern.permute.xlu1 %v1767_v18  ;;  %1657 = vset.pattern.permute.xlu0 %v1768_v57  ;;  %v278_v38 = vpop.f32.mrb[5].mxu1 }
 0x1bc   :  { %470 = vperm.xlu0 %1657, %v258_v56   ;;  %394 = vperm.xlu1 %1659, %v1558_v32  }
 0x1be   :  { %v2052_v47 = vpop.f32.mrb[6].mxu1 }
 0x1bf   :  { %v288_v48 = vpop.f32.mrb[7].mxu1 }
 0x1c0   :  { %1658 = vset.pattern.permute.xlu0 %v1766_v17  ;;  %390 = vperm.xlu1 %1659, %v268_v37  }
 0x1c1   :  { %426 = vperm.xlu0 %1658, %v258_v56  }
 0x1c4   :  { %402 = vperm.xlu1 %1659, %v2049_v33  }
 0x1c5   :  { %1660 = vset.pattern.permute.xlu0 %v1768_v57 }
 0x1c6   :  { %482 = vperm.xlu0 %1660, %v1558_v32  }
 0x1c8   :  { %398 = vperm.xlu1 %1659, %v278_v38  }
 0x1ca   :  { %1661 = vset.pattern.permute.xlu0 %v1766_v17 }
 0x1cb   :  { %438 = vperm.xlu0 %1661, %v1558_v32  }
 0x1cc   :  { %406 = vperm.xlu1 %1659, %v288_v48  }
 0x1cf   :  { %1662 = vset.pattern.permute.xlu0 %v1768_v57 }
 0x1d0   :  { %478 = vperm.xlu0 %1662, %v268_v37   ;;  %1668 = vset.pattern.permute.xlu1 %v1766_v17 }
 0x1d1   :  { %442 = vperm.xlu1 %1668, %v278_v38  }
 0x1d4   :  { %1663 = vset.pattern.permute.xlu0 %v1766_v17 }
 0x1d5   :  { %434 = vperm.xlu0 %1663, %v268_v37   ;;  %1669 = vset.pattern.permute.xlu1 %v1769_v58 }
 0x1d6   :  { %356 = vperm.xlu1 %1669, %v2049_v33  }
 0x1d9   :  { %1664 = vset.pattern.permute.xlu0 %v1768_v57 }
 0x1da   :  { %490 = vperm.xlu0 %1664, %v2049_v33  }
 0x1de   :  { %486 = vperm.xlu0 %1664, %v278_v38  }
 0x1e2   :  { %1665 = vset.pattern.permute.xlu0 %v1767_v18 }
 0x1e3   :  { %410 = vperm.xlu0 %1665, %v2052_v47  }
 0x1e7   :  { %1666 = vset.pattern.permute.xlu0 %v1768_v57 }
 0x1e8   :  { %498 = vperm.xlu0 %1666, %v2052_v47  }
 0x1ec   :  { %494 = vperm.xlu0 %1666, %v288_v48  }
 0x1f0   :  { %1667 = vset.pattern.permute.xlu0 %v1769_v58 }
 0x1f1   :  { %331 = vperm.xlu0 %1667, %v258_v56  }
 0x1f5   :  { %336 = vperm.xlu0 %1667, %v1555_v55  }
 0x1f9   :  { %341 = vperm.xlu0 %1667, %v268_v37  }
 0x1fd   :  { %346 = vperm.xlu0 %1667, %v1558_v32  }
 0x1ff   :  { %297 = vxpose.xlu1.b32.start [1/8] (short) (narrow) %v258_v56, 8 }
 0x201   :  { %351 = vperm.xlu0 %1667, %v278_v38  }
 0x203   :  { %298 = vxpose.xlu1.b32.cont [2/8] (short) (narrow) %v1555_v55, 8 }
 0x205   :  { %361 = vperm.xlu0 %1667, %v288_v48  }
 0x207   :  { %299 = vxpose.xlu1.b32.cont [3/8] (short) (narrow) %v268_v37, 8 }
 0x209   :  { %1670 = vset.pattern.permute.xlu0 %v1766_v17 }
 0x20b   :  { %300 = vxpose.xlu1.b32.cont [4/8] (short) (narrow) %v1558_v32, 8 }
 0x20f   :  { %301 = vxpose.xlu1.b32.cont [5/8] (short) (narrow) %v278_v38, 8 }
 0x213   :  { %302 = vxpose.xlu1.b32.cont [6/8] (short) (narrow) %v2049_v33, 8 }
 0x217   :  { %303 = vxpose.xlu1.b32.cont [7/8] (short) (narrow) %v288_v48, 8 }
 0x21b   :  { %304 = vxpose.xlu1.b32.end [8/8] (short) (narrow) %v2052_v47, 8 }
 0x231   :  { %v387_v18 = vpop.permute.xlu1 %386  ;;  %v2069_v60 = vpop.permute.xlu0 %430 }
 0x236   :  { %v475_v59 = vpop.permute.xlu1 %474  ;;  %v383_v62 = vpop.permute.xlu0 %382 }
 0x239   :  { %1671 = vset.pattern.permute.xlu1 %v1766_v17  ;;  %v369_v17 = vlaneseq }
 0x23a   :  { %450 = vperm.xlu1 %1671, %v288_v48   ;;  %v770_v48 = vld [vmem:[%s2489_s4 + $0x80] sm:$0xff] }
 0x23b   :  { %v395_v61 = vpop.permute.xlu1 %394  ;;  %v471_v0 = vpop.permute.xlu0 %470  ;;  %v370_v10 = vshrl.u32 %v369_v17, 7 }
 0x23d   :  { %v371_v13 = vsub.s32 0, %v370_v10  ;;  %v415_v14 = vsub.s32 1, %v370_v10  ;;  %v459_v15 = vsub.s32 2, %v370_v10  ;;  %v503_v16 = vsub.s32 3, %v370_v10  ;;  %v759_v10 = vld [vmem:[%s2489_s4 + $0x28] sm:$0xff] }
 0x23e   :  { %1672 = vset.pattern.permute.xlu1 %v1769_v58  ;;  %v754_v58 = vld [vmem:[%s2489_s4] sm:$0xff] }
 0x23f   :  { %366 = vperm.xlu1 %1672, %v2052_v47   ;;  %v391_v63 = vpop.permute.xlu1 %390 }
 0x240   :  { %v2071_v3 = vpop.permute.xlu0 %426 }
 0x243   :  { %v403_v2 = vpop.permute.xlu1 %402 }
 0x245   :  { %v483_v5 = vpop.permute.xlu0 %482 }
 0x247   :  { %v399_v4 = vpop.permute.xlu1 %398 }
 0x24a   :  { %v439_v8 = vpop.permute.xlu0 %438 }
 0x24b   :  { %v407_v6 = vpop.permute.xlu1 %406 }
 0x24f   :  { %v479_v11 = vpop.permute.xlu0 %478 }
 0x250   :  { %v443_v9 = vpop.permute.xlu1 %442 }
 0x254   :  { %v435_v19 = vpop.permute.xlu0 %434 }
 0x255   :  { %v357_v12 = vpop.permute.xlu1 %356 }
 0x259   :  { %v491_v30 = vpop.permute.xlu0 %490 }
 0x25d   :  { %v487_v45 = vpop.permute.xlu0 %486 }
 0x262   :  { %v411_v49 = vpop.permute.xlu0 %410 }
 0x267   :  { %v499_v55 = vpop.permute.xlu0 %498 }
 0x26b   :  { %v495_v57 = vpop.permute.xlu0 %494 }
 0x27f   :  { %v313_v20 = vpop.trf.xlu1 }
 0x280   :  { %v2073_v21 = vrot.slane %v313_v20, %v371_v13  ;;  %v416_v22 = vrot.slane %v313_v20, %v415_v14  ;;  %v2075_v23 = vrot.slane %v313_v20, %v459_v15  ;;  %v504_v24 = vrot.slane %v313_v20, %v503_v16 }
 0x282   :  { %v505_v26 = vadd.f32 %v504_v24, %v471_v0  ;;  %v418_v29 = vadd.f32 %v416_v22, %v387_v18  ;;  %v420_v31 = vadd.f32 %v416_v22, %v395_v61  ;;  %v506_v34 = vadd.f32 %v504_v24, %v475_v59  ;;  %v755_v59 = vld [vmem:[%s2489_s4 + $0x8] sm:$0xff]  ;;  %v772_v61 = vld [vmem:[%s2489_s4 + $0x90] sm:$0xff] }
 0x283   :  { %v2082_v36 = vadd.f32 %v2075_v23, %v439_v8  ;;  %v2085_v39 = vadd.f32 %v2073_v21, %v357_v12  ;;  %v2088_v40 = vadd.f32 %v2075_v23, %v435_v19  ;;  %v2091_v41 = vadd.f32 %v2075_v23, %v443_v9  ;;  %v758_v9 = vld [vmem:[%s2489_s4 + $0x20] sm:$0xff]  ;;  %v332_v12 = vpop.permute.xlu0 %331 }
 0x284   :  { %553 = vrot.lane.b32.xlu1 %v505_v26, %s1770_s5  ;;  %523 = vrot.lane.b32.xlu0 %v418_v29, %s1770_s5  ;;  %v508_v42 = vadd.f32 %v504_v24, %v483_v5  ;;  %v417_v43 = vadd.f32 %v416_v22, %v383_v62  ;;  %v419_v46 = vadd.f32 %v416_v22, %v391_v63  ;;  %v773_v62 = vld [vmem:[%s2489_s4 + $0x98] sm:$0xff]  ;;  %v774_v5 = vld [vmem:[%s2489_s4 + $0xa0] sm:$0xff] }
 0x285   :  { %v421_v51 = vadd.f32 %v416_v22, %v399_v4  ;;  %v507_v52 = vadd.f32 %v504_v24, %v479_v11  ;;  %v422_v53 = vadd.f32 %v416_v22, %v403_v2  ;;  %v509_v54 = vadd.f32 %v504_v24, %v487_v45  ;;  %v756_v2 = vld [vmem:[%s2489_s4 + $0x10] sm:$0xff]  ;;  %v757_v4 = vld [vmem:[%s2489_s4 + $0x18] sm:$0xff] }
 0x286   :  { %v510_v56 = vadd.f32 %v504_v24, %v491_v30  ;;  %v511_v32 = vadd.f32 %v504_v24, %v495_v57  ;;  %v423_v37 = vadd.f32 %v416_v22, %v407_v6  ;;  %v424_v38 = vadd.f32 %v416_v22, %v411_v49  ;;  %v775_v6 = vld [vmem:[%s2489_s4 + $0xa8] sm:$0xff] }
 0x287   :  { %v1579_v63 = vpack.c.bf16 %v755_v59, %v754_v58  ;;  %v1581_v0 = vpack.c.bf16 %v773_v62, %v772_v61  ;;  %v1583_v8 = vpack.c.bf16 %v757_v4, %v756_v2  ;;  %v1585_v17 = vpack.c.bf16 %v775_v6, %v774_v5  ;;  %v337_v13 = vpop.permute.xlu0 %336  ;;  %v643_v58 = vld [vmem:[%s2490_s3 + $0x8] sm:$0xff] }
 0x288   :  { %527 = vrot.lane.b32.xlu1 %v420_v31, %s1770_s5  ;;  %555 = vrot.lane.b32.xlu0 %v506_v34, %s1770_s5  ;;  %v1587_v11 = vpack.c.bf16 %v759_v10, %v758_v9  ;;  %v461_v31 = vadd.f32 %v2075_v23, %v2071_v3  ;;  %v645_v3 = vld [vmem:[%s2490_s3 + $0x18] sm:$0xff] }
 0x28b   :  { %v342_v14 = vpop.permute.xlu0 %341 }
 0x28c   :  { %559 = vrot.lane.b32.xlu1 %v508_v42, %s1770_s5  ;;  %521 = vrot.lane.b32.xlu0 %v417_v43, %s1770_s5  ;;  %v462_v43 = vadd.f32 %v2075_v23, %v2069_v60  ;;  %v375_v5 = vadd.f32 %v2073_v21, %v342_v14 }
 0x28f   :  { %v347_v15 = vpop.permute.xlu0 %346 }
 0x290   :  { %525 = vrot.lane.b32.xlu1 %v419_v46, %s1770_s5  ;;  %446 = vperm.xlu0 %1670, %v2049_v33   ;;  %v512_v33 = vadd.f32 %v504_v24, %v499_v55  ;;  %v374_v24 = vadd.f32 %v2073_v21, %v337_v13  ;;  %v373_v55 = vadd.f32 %v2073_v21, %v332_v12 }
 0x293   :  { %v352_v16 = vpop.permute.xlu0 %351 }
 0x294   :  { %529 = vrot.lane.b32.xlu1 %v421_v51, %s1770_s5  ;;  %557 = vrot.lane.b32.xlu0 %v507_v52, %s1770_s5  ;;  %v644_v51 = vld [vmem:[%s2490_s3 + $0x10] sm:$0xff]  ;;  %v377_v14 = vadd.f32 %v2073_v21, %v352_v16 }
 0x297   :  { %v2145_v20 = vpop.permute.xlu0 %361 }
 0x298   :  { %531 = vrot.lane.b32.xlu1 %v422_v53, %s1770_s5  ;;  %561 = vrot.lane.b32.xlu0 %v509_v54, %s1770_s5 }
 0x29c   :  { %563 = vrot.lane.b32.xlu1 %v510_v56, %s1770_s5  ;;  %454 = vperm.xlu0 %1670, %v2052_v47   ;;  %v771_v47 = vld [vmem:[%s2489_s4 + $0x88] sm:$0xff] }
 0x29d   :  { %v1577_v18 = vpack.c.bf16 %v771_v47, %v770_v48  ;;  %v642_v47 = vld [vmem:[%s2490_s3] sm:$0xff] }
 0x29f   :  { %1578 = vmatprep.subr.bf16.mxu0 %v1577_v18 }
 0x2a0   :  { %565 = vrot.lane.b32.xlu1 %v511_v32, %s1770_s5  ;;  %533 = vrot.lane.b32.xlu0 %v423_v37, %s1770_s5 }
 0x2a1   :  { %1580 = vmatpush3.bf16.msra.mxu0 %v1579_v63 }
 0x2a2   :  { %1582 = vmatprep.subr.bf16.mxu0 %v1581_v0 }
 0x2a4   :  { %567 = vrot.lane.b32.xlu1 %v512_v33, %s1770_s5  ;;  %535 = vrot.lane.b32.xlu0 %v424_v38, %s1770_s5 }
 0x2a5   :  { %1584 = vmatpush3.bf16.msra.mxu0 %v1583_v8  ;;  %v376_v8 = vadd.f32 %v2073_v21, %v347_v15 }
 0x2a6   :  { %1586 = vmatprep.subr.bf16.mxu0 %v1585_v17 }
 0x2a9   :  { %1588 = vmatpush3.bf16.msra.mxu0 %v1587_v11 }
 0x2b9   :  { %v2143_v19 = vpop.permute.xlu1 %450 }
 0x2be   :  { %v2147_v22 = vpop.permute.xlu1 %366 }
 0x2f6   :  { %v524_v26 = vpop.permute.xlu0 %523  ;;  %v554_v29 = vpop.permute.xlu1 %553 }
 0x2f7   :  { %v579_v30 = vsel %vm577_vm2, %v374_v24, %v524_v26  ;;  %v586_v42 = vsel %vm577_vm2, %v461_v31, %v554_v29 }
 0x2f8   :  { %v612_v34 = vmul.f32 0.01, %v579_v30  ;;  %vm596_vm3 = vcmp.gt.f32.partialorder %v579_v30, 0.0  ;;  %v611_v53 = vmul.f32 0.01, %v586_v42  ;;  %vm595_vm5 = vcmp.gt.f32.partialorder %v586_v42, 0.0 }
 0x2fa   :  { %v556_v45 = vpop.permute.xlu0 %555  ;;  %v528_v46 = vpop.permute.xlu1 %527  ;;  %v628_v52 = vsel %vm596_vm3, %v579_v30, %v612_v34  ;;  %v627_v38 = vsel %vm595_vm5, %v586_v42, %v611_v53  ;;  %v653_v42 = vld [vmem:[%s2490_s3 + $0x58] sm:$0xff]  ;;  %v647_v53 = vld [vmem:[%s2490_s3 + $0x28] sm:$0xff] }
 0x2fb   :  { %v587_v49 = vsel %vm577_vm2, %v462_v43, %v556_v45  ;;  %v2165_v37 = vadd.f32 %v644_v51, %v628_v52  ;;  %v2179_v63 = vadd.f32 %v643_v58, %v627_v38  ;;  %v581_v9 = vsel %vm577_vm2, %v376_v8, %v528_v46  ;;  %v646_v46 = vld [vmem:[%s2490_s3 + $0x20] sm:$0xff]  ;;  %v649_v38 = vld [vmem:[%s2490_s3 + $0x38] sm:$0xff] }
 0x2fc   :  { %vm597_vm4 = vcmp.gt.f32.partialorder %v587_v49, 0.0  ;;  %v613_v54 = vmul.f32 0.01, %v587_v49  ;;  %vm600_vm9 = vcmp.gt.f32.partialorder %v581_v9, 0.0 }
 0x2fe   :  { %v629_v60 = vsel %vm597_vm4, %v587_v49, %v613_v54  ;;  %v522_v56 = vpop.permute.xlu0 %521  ;;  %v560_v57 = vpop.permute.xlu1 %559  ;;  %v467_v49 = vadd.f32 %v2075_v23, %v2143_v19 }
 0x2ff   :  { %v578_v32 = vsel %vm577_vm2, %v373_v55, %v522_v56  ;;  %v2167_v33 = vadd.f32 %v645_v3, %v629_v60  ;;  %v589_v10 = vsel %vm577_vm2, %v2082_v36, %v560_v57  ;;  %v652_v36 = vld [vmem:[%s2490_s3 + $0x50] sm:$0xff] }
 0x300   :  { %vm594_vm6 = vcmp.gt.f32.partialorder %v578_v32, 0.0  ;;  %v610_v48 = vmul.f32 0.01, %v578_v32  ;;  %v617_v15 = vmul.f32 0.01, %v589_v10  ;;  %vm601_vm10 = vcmp.gt.f32.partialorder %v589_v10, 0.0 }
 0x301   :  { %v677_v18 = vmax.f32 %v2165_v37, %v2167_v33 }
 0x302   :  { %v626_v59 = vsel %vm594_vm6, %v578_v32, %v610_v48  ;;  %v526_v61 = vpop.permute.xlu1 %525  ;;  %v633_v3 = vsel %vm601_vm10, %v589_v10, %v617_v15  ;;  %v776_v48 = vld [vmem:[%s2489_s4 + $0xb0] sm:$0xff]  ;;  %vm1220_vm6 = vcmask 64512  }
 0x303   :  { %678 = vmax.xlane.f32.xlu1 %v677_v18  ;;  %v2177_v62 = vadd.f32 %v642_v47, %v626_v59  ;;  %v580_v17 = vsel %vm577_vm2, %v375_v5, %v526_v61  ;;  %v777_v47 = vld [vmem:[%s2489_s4 + $0xb8] sm:$0xff]  ;;  %v648_v61 = vld [vmem:[%s2490_s3 + $0x30] sm:$0xff] }
 0x304   :  { %v614_v13 = vmul.f32 0.01, %v580_v17  ;;  %vm598_vm8 = vcmp.gt.f32.partialorder %v580_v17, 0.0 }
 0x305   :  { %v674_v0 = vmax.f32 %v2177_v62, %v2179_v63 }
 0x306   :  { %v530_v2 = vpop.permute.xlu1 %529  ;;  %v630_v16 = vsel %vm598_vm8, %v580_v17, %v614_v13  ;;  %v2246_v17 = vadd.f32 %v649_v38, %v633_v3  ;;  %v651_v13 = vld [vmem:[%s2490_s3 + $0x48] sm:$0xff] }
 0x307   :  { %675 = vmax.xlane.f32.xlu0 %v674_v0  ;;  %v582_v43 = vsel %vm577_vm2, %v377_v14, %v530_v2  ;;  %v2217_v32 = vadd.f32 %v646_v46, %v630_v16  ;;  %v1589_v0 = vpack.c.bf16 %v777_v47, %v776_v48  ;;  %v760_v2 = vld [vmem:[%s2489_s4 + $0x30] sm:$0xff]  ;;  %v781_v16 = vld [vmem:[%s2489_s4 + $0xd8] sm:$0xff]  ;;  %v655_v38 = vld [vmem:[%s2490_s3 + $0x68] sm:$0xff] }
 0x308   :  { %vm602_vm13 = vcmp.gt.f32.partialorder %v582_v43, 0.0  ;;  %v618_v56 = vmul.f32 0.01, %v582_v43  ;;  %v766_v47 = vld [vmem:[%s2489_s4 + $0x60] sm:$0xff] }
 0x309   :  { %1590 = vmatprep.subr.bf16.mxu0 %v1589_v0  ;;  %v784_v0 = vld [vmem:[%s2489_s4 + $0xf0] sm:$0xff] }
 0x30a   :  { %v532_v4 = vpop.permute.xlu1 %531  ;;  %v634_v14 = vsel %vm602_vm13, %v582_v43, %v618_v56  ;;  %v764_v43 = vld [vmem:[%s2489_s4 + $0x50] sm:$0xff] }
 0x30b   :  { %v583_v6 = vsel %vm577_vm2, %v2085_v39, %v532_v4  ;;  %v616_v39 = vmul.f32 0.01, %v581_v9  ;;  %v761_v4 = vld [vmem:[%s2489_s4 + $0x38] sm:$0xff] }
 0x30c   :  { %v620_v11 = vmul.f32 0.01, %v583_v6  ;;  %vm604_vm7 = vcmp.gt.f32.partialorder %v583_v6, 0.0 }
 0x30d   :  { %v632_v54 = vsel %vm600_vm9, %v581_v9, %v616_v39  ;;  %v650_v9 = vld [vmem:[%s2490_s3 + $0x40] sm:$0xff] }
 0x30e   :  { %v564_v24 = vpop.permute.xlu1 %563  ;;  %v636_v30 = vsel %vm604_vm7, %v583_v6, %v620_v11  ;;  %v1591_v6 = vpack.c.bf16 %v761_v4, %v760_v2  ;;  %v2295_v3 = vadd.f32 %v650_v9, %v634_v14  ;;  %v785_v2 = vld [vmem:[%s2489_s4 + $0xf8] sm:$0xff]  ;;  %v380_v4 = vadd.f32 %v2073_v21, %v2147_v22  ;;  %v656_v14 = vld [vmem:[%s2490_s3 + $0x70] sm:$0xff] }
 0x30f   :  { %v447_v12 = vpop.permute.xlu0 %446  ;;  %v769_v22 = vld [vmem:[%s2489_s4 + $0x78] sm:$0xff]  ;;  %vm1237_vm7 = vcmask 195584  }
 0x310   :  { %v466_v26 = vadd.f32 %v2075_v23, %v447_v12  ;;  %v2251_v12 = vadd.f32 %v648_v61, %v632_v54  ;;  %1592 = vmatpush3.bf16.msra.mxu0 %v1591_v6  ;;  %v654_v61 = vld [vmem:[%s2490_s3 + $0x60] sm:$0xff] }
 0x312   :  { %v591_v29 = vsel %vm577_vm2, %v466_v26, %v564_v24  ;;  %v566_v55 = vpop.permute.xlu1 %565  ;;  %v778_v24 = vld [vmem:[%s2489_s4 + $0xc0] sm:$0xff]  ;;  %v779_v26 = vld [vmem:[%s2489_s4 + $0xc8] sm:$0xff] }
 0x313   :  { %v621_v31 = vmul.f32 0.01, %v591_v29  ;;  %v558_v34 = vpop.permute.xlu0 %557  ;;  %vm605_vm11 = vcmp.gt.f32.partialorder %v591_v29, 0.0 }
 0x314   :  { %v588_v45 = vsel %vm577_vm2, %v2088_v40, %v558_v34  ;;  %v2213_v40 = vadd.f32 %v652_v36, %v636_v30  ;;  %v762_v30 = vld [vmem:[%s2489_s4 + $0x40] sm:$0xff]  ;;  %v780_v34 = vld [vmem:[%s2489_s4 + $0xd0] sm:$0xff]  ;;  %v379_v36 = vadd.f32 %v2073_v21, %v2145_v20  ;;  %v683_v20 = vmax.f32 %v2251_v12, %v2246_v17 }
 0x315   :  { %vm599_vm12 = vcmp.gt.f32.partialorder %v588_v45, 0.0  ;;  %v615_v51 = vmul.f32 0.01, %v588_v45  ;;  %v637_v52 = vsel %vm605_vm11, %v591_v29, %v621_v31  ;;  %v1593_v29 = vpack.c.bf16 %v779_v26, %v778_v24  ;;  %v763_v31 = vld [vmem:[%s2489_s4 + $0x48] sm:$0xff]  ;;  %v768_v21 = vld [vmem:[%s2489_s4 + $0x70] sm:$0xff] }
 0x316   :  { %v2215_v60 = vadd.f32 %v653_v42, %v637_v52  ;;  %v568_v42 = vpop.permute.xlu1 %567  ;;  %v782_v52 = vld [vmem:[%s2489_s4 + $0xe0] sm:$0xff] }
 0x317   :  { %v631_v57 = vsel %vm599_vm12, %v588_v45, %v615_v51  ;;  %v562_v19 = vpop.permute.xlu0 %561  ;;  %v765_v45 = vld [vmem:[%s2489_s4 + $0x58] sm:$0xff]  ;;  %1594 = vmatprep.subr.bf16.mxu0 %v1593_v29  ;;  %v1597_v51 = vpack.c.bf16 %v781_v16, %v780_v34 }
 0x318   :  { %v590_v58 = vsel %vm577_vm2, %v2091_v41, %v562_v19  ;;  %v689_v18 = vmax.f32 %v2213_v40, %v2215_v60  ;;  %v2232_v59 = vadd.f32 %v647_v53, %v631_v57  ;;  %v592_v41 = vsel %vm577_vm2, %v467_v49, %v566_v55  ;;  %v783_v53 = vld [vmem:[%s2489_s4 + $0xe8] sm:$0xff] }
 0x319   :  { %vm603_vm14 = vcmp.gt.f32.partialorder %v590_v58, 0.0  ;;  %v619_v5 = vmul.f32 0.01, %v590_v58  ;;  %v623_v39 = vmul.f32 0.01, %v592_v41  ;;  %vm607_vm15 = vcmp.gt.f32.partialorder %v592_v41, 0.0 }
 0x31a   :  { %690 = vmax.xlane.f32.xlu1 %v689_v18  ;;  %v680_v8 = vmax.f32 %v2217_v32, %v2232_v59  ;;  %v1599_v55 = vpack.c.bf16 %v765_v45, %v764_v43  ;;  %v1601_v48 = vpack.c.bf16 %v783_v53, %v782_v52 }
 0x31b   :  { %v635_v10 = vsel %vm603_vm14, %v590_v58, %v619_v5  ;;  %v455_v11 = vpop.permute.xlu0 %454  ;;  %v639_v56 = vsel %vm607_vm15, %v592_v41, %v623_v39  ;;  %v767_v58 = vld [vmem:[%s2489_s4 + $0x68] sm:$0xff]  ;;  %v657_v39 = vld [vmem:[%s2490_s3 + $0x78] sm:$0xff]  ;;  %s1775_s3 = smov 96   ;;  %s1776_s4 = smov 32   ;;  %vm1362_vm15 = vcmask 785408  }
 0x31c   :  { %v468_v15 = vadd.f32 %v2075_v23, %v455_v11  ;;  %681 = vmax.xlane.f32.xlu0 %v680_v8  ;;  %v1595_v23 = vpack.c.bf16 %v763_v31, %v762_v30  ;;  %v2287_v49 = vadd.f32 %v651_v13, %v635_v10  ;;  %v2321_v8 = vadd.f32 %v655_v38, %v639_v56 }
 0x31d   :  { %v1603_v9 = vpack.c.bf16 %v767_v58, %v766_v47  ;;  %v1605_v13 = vpack.c.bf16 %v785_v2, %v784_v0  ;;  %v1607_v30 = vpack.c.bf16 %v769_v22, %v768_v21 }
 0x31e   :  { %v593_v46 = vsel %vm577_vm2, %v468_v15, %v568_v42  ;;  %1596 = vmatpush3.bf16.msra.mxu0 %v1595_v23  ;;  %v686_v41 = vmax.f32 %v2295_v3, %v2287_v49 }
 0x31f   :  { %v534_v54 = vpop.permute.xlu0 %533  ;;  %v625_v57 = vmul.f32 0.01, %v593_v46  ;;  %1598 = vmatprep.subr.bf16.mxu0 %v1597_v51  ;;  %vm609_vm4 = vcmp.gt.f32.partialorder %v593_v46, 0.0 }
 0x320   :  { %v584_v19 = vsel %vm577_vm2, %v379_v36, %v534_v54  ;;  %684 = vmax.xlane.f32.xlu0 %v683_v20 }
 0x321   :  { %vm606_vm3 = vcmp.gt.f32.partialorder %v584_v19, 0.0  ;;  %v622_v18 = vmul.f32 0.01, %v584_v19  ;;  %v641_v26 = vsel %vm609_vm4, %v593_v46, %v625_v57 }
 0x322   :  { %1600 = vmatpush3.bf16.msra.mxu0 %v1599_v55  ;;  %v2342_v34 = vadd.f32 %v657_v39, %v641_v26 }
 0x323   :  { %v638_v5 = vsel %vm606_vm3, %v584_v19, %v622_v18  ;;  %v536_v6 = vpop.permute.xlu0 %535  ;;  %1602 = vmatprep.subr.bf16.mxu0 %v1601_v48 }
 0x324   :  { %v585_v10 = vsel %vm577_vm2, %v380_v4, %v536_v6  ;;  %687 = vmax.xlane.f32.xlu0 %v686_v41  ;;  %v2324_v11 = vadd.f32 %v654_v61, %v638_v5 }
 0x325   :  { %vm608_vm5 = vcmp.gt.f32.partialorder %v585_v10, 0.0  ;;  %v624_v24 = vmul.f32 0.01, %v585_v10 }
 0x326   :  { %v692_v15 = vmax.f32 %v2324_v11, %v2321_v8  ;;  %1604 = vmatpush3.bf16.msra.mxu0 %v1603_v9 }
 0x327   :  { %v640_v29 = vsel %vm608_vm5, %v585_v10, %v624_v24  ;;  %1606 = vmatprep.subr.bf16.mxu0 %v1605_v13 }
 0x328   :  { %693 = vmax.xlane.f32.xlu0 %v692_v15  ;;  %v2340_v31 = vadd.f32 %v656_v14, %v640_v29 }
 0x32a   :  { %v695_v36 = vmax.f32 %v2340_v31, %v2342_v34  ;;  %1608 = vmatpush3.bf16.msra.mxu0 %v1607_v30 }
 0x32c   :  { %696 = vmax.xlane.f32.xlu1 %v695_v36 }
 0x390   :  { %v679_v42 = vpop.xlane.xlu1 %678 }
 0x391   :  { %v699_v23 = vmax.f32 %v679_v42, -1e+20 }
 0x393   :  { %v709_v45 = vsub.f32 %v2167_v33, %v699_v23  ;;  %v708_v51 = vsub.f32 %v2165_v37, %v699_v23 }
 0x394   :  { %v676_v16 = vpop.xlane.xlu0 %675 }
 0x395   :  { %v698_v43 = vmax.f32 %v676_v16, -1e+20  ;;  %v728_v54 = vmul.f32 1.442695, %v709_v45  ;;  %v726_v55 = vmul.f32 1.442695, %v708_v51 }
 0x397   :  { %v706_v46 = vsub.f32 %v2177_v62, %v698_v43  ;;  %v707_v20 = vsub.f32 %v2179_v63, %v698_v43 }
 0x399   :  { %v722_v52 = vmul.f32 1.442695, %v706_v46  ;;  %v724_v53 = vmul.f32 1.442695, %v707_v20 }
 0x39b   :  { %1702 = vpow2.f32 %v722_v52  ;;  %v1771_v52 = vmov 0  }
 0x39c   :  { %1704 = vpow2.f32 %v724_v53  ;;  %1673 = vset.pattern.permute.xlu0 %v1771_v52  ;;  %1674 = vset.pattern.permute.xlu1 %v1771_v52 }
 0x39d   :  { %1706 = vpow2.f32 %v728_v54 }
 0x39e   :  { %1708 = vpow2.f32 %v726_v55 }
 0x3a5   :  { %v1703_v56 = vpop.eup %1702 }
 0x3a6   :  { %v1705_v57 = vpop.eup %1704 }
 0x3a7   :  { %850 = vmatprep.mubr.f32.mxu0 %v1705_v57  ;;  %1043 = vmatprep.mubr.f32.mxu1 %v1705_v57  ;;  %v1707_v19 = vpop.eup %1706  ;;  %v691_v63 = vpop.xlane.xlu1 %690 }
 0x3a8   :  { %851 = vmatmul.mubr.f32.vlgmr.msra.gmra.mrb[8].mxu0 %v1703_v56  ;;  %1044 = vmatmul.mubr.f32.vlgmr.msra.gmra.mrb[8].mxu1 %v1703_v56  ;;  %v1709_v37 = vpop.eup %1708  ;;  %v703_v0 = vmax.f32 %v691_v63, -1e+20 }
 0x3a9   :  { %855 = vmatprep.mubr.f32.mxu0 %v1707_v19  ;;  %1048 = vmatprep.mubr.f32.mxu1 %v1707_v19  ;;  %v682_v33 = vpop.xlane.xlu0 %681 }
 0x3aa   :  { %v700_v62 = vmax.f32 %v682_v33, -1e+20  ;;  %v716_v21 = vsub.f32 %v2213_v40, %v703_v0 }
 0x3ac   :  { %v710_v38 = vsub.f32 %v2217_v32, %v700_v62  ;;  %v711_v48 = vsub.f32 %v2232_v59, %v700_v62  ;;  %856 = vmatmul.mubr.f32.gmra.mrb[10].mxu0 %v1709_v37  ;;  %1049 = vmatmul.mubr.f32.gmra.mrb[10].mxu1 %v1709_v37  ;;  %v717_v32 = vsub.f32 %v2215_v60, %v703_v0  ;;  %v742_v60 = vmul.f32 1.442695, %v716_v21 }
 0x3ad   :  { %v685_v47 = vpop.xlane.xlu0 %684  ;;  %v1772_v0 = vmov 2  }
 0x3ae   :  { %v730_v58 = vmul.f32 1.442695, %v710_v38  ;;  %v732_v18 = vmul.f32 1.442695, %v711_v48  ;;  %v701_v61 = vmax.f32 %v685_v47, -1e+20 }
 0x3b0   :  { %1710 = vpow2.f32 %v730_v58  ;;  %v712_v2 = vsub.f32 %v2251_v12, %v701_v61  ;;  %v713_v4 = vsub.f32 %v2246_v17, %v701_v61  ;;  %v744_v17 = vmul.f32 1.442695, %v717_v32 }
 0x3b1   :  { %1712 = vpow2.f32 %v732_v18  ;;  %v688_v41 = vpop.xlane.xlu0 %687 }
 0x3b2   :  { %v734_v5 = vmul.f32 1.442695, %v712_v2  ;;  %v736_v6 = vmul.f32 1.442695, %v713_v4  ;;  %v702_v9 = vmax.f32 %v688_v41, -1e+20 }
 0x3b4   :  { %1714 = vpow2.f32 %v734_v5  ;;  %v714_v59 = vsub.f32 %v2295_v3, %v702_v9  ;;  %v715_v10 = vsub.f32 %v2287_v49, %v702_v9 }
 0x3b5   :  { %1716 = vpow2.f32 %v736_v6  ;;  %v694_v13 = vpop.xlane.xlu0 %693 }
 0x3b6   :  { %v738_v22 = vmul.f32 1.442695, %v714_v59  ;;  %v740_v12 = vmul.f32 1.442695, %v715_v10  ;;  %v704_v24 = vmax.f32 %v694_v13, -1e+20 }
 0x3b8   :  { %1718 = vpow2.f32 %v738_v22  ;;  %v719_v26 = vsub.f32 %v2321_v8, %v704_v24  ;;  %v718_v15 = vsub.f32 %v2324_v11, %v704_v24 }
 0x3b9   :  { %1720 = vpow2.f32 %v740_v12  ;;  %v697_v14 = vpop.xlane.xlu1 %696 }
 0x3ba   :  { %v1711_v39 = vpop.eup %1710  ;;  %v705_v3 = vmax.f32 %v697_v14, -1e+20  ;;  %1722 = vpow2.f32 %v744_v17  ;;  %v748_v49 = vmul.f32 1.442695, %v719_v26  ;;  %v746_v36 = vmul.f32 1.442695, %v718_v15 }
 0x3bb   :  { %v1713_v29 = vpop.eup %1712  ;;  %1724 = vpow2.f32 %v742_v60 }
 0x3bc   :  { %v721_v30 = vsub.f32 %v2342_v34, %v705_v3  ;;  %860 = vmatprep.mubr.f32.mxu0 %v1713_v29  ;;  %1053 = vmatprep.mubr.f32.mxu1 %v1713_v29  ;;  %v720_v8 = vsub.f32 %v2340_v31, %v705_v3  ;;  %1726 = vpow2.f32 %v748_v49 }
 0x3bd   :  { %861 = vmatmul.mubr.f32.gmra.mrb[12].mxu0 %v1711_v39  ;;  %1054 = vmatmul.mubr.f32.gmra.mrb[12].mxu1 %v1711_v39  ;;  %1728 = vpow2.f32 %v746_v36 }
 0x3be   :  { %v1715_v40 = vpop.eup %1714  ;;  %v752_v23 = vmul.f32 1.442695, %v721_v30  ;;  %v750_v16 = vmul.f32 1.442695, %v720_v8 }
 0x3bf   :  { %v1717_v42 = vpop.eup %1716 }
 0x3c0   :  { %865 = vmatprep.mubr.f32.mxu0 %v1717_v42  ;;  %1058 = vmatprep.mubr.f32.mxu1 %v1717_v42  ;;  %1730 = vpow2.f32 %v752_v23 }
 0x3c1   :  { %866 = vmatmul.mubr.f32.gmra.mrb[14].mxu0 %v1715_v40  ;;  %1059 = vmatmul.mubr.f32.gmra.mrb[14].mxu1 %v1715_v40  ;;  %1732 = vpow2.f32 %v750_v16 }
 0x3c2   :  { %v1719_v11 = vpop.eup %1718 }
 0x3c3   :  { %v1721_v34 = vpop.eup %1720 }
 0x3c4   :  { %870 = vmatprep.mubr.f32.mxu0 %v1721_v34  ;;  %1063 = vmatprep.mubr.f32.mxu1 %v1721_v34  ;;  %v1723_v43 = vpop.eup %1722 }
 0x3c5   :  { %871 = vmatmul.mubr.f32.gmra.mrb[16].mxu0 %v1719_v11  ;;  %1064 = vmatmul.mubr.f32.gmra.mrb[16].mxu1 %v1719_v11  ;;  %v1725_v31 = vpop.eup %1724 }
 0x3c6   :  { %875 = vmatprep.mubr.f32.mxu0 %v1723_v43  ;;  %1068 = vmatprep.mubr.f32.mxu1 %v1723_v43  ;;  %v1727_v45 = vpop.eup %1726 }
 0x3c7   :  { %v1729_v46 = vpop.eup %1728 }
 0x3c9   :  { %876 = vmatmul.mubr.f32.gmra.mrb[18].mxu0 %v1725_v31  ;;  %1069 = vmatmul.mubr.f32.gmra.mrb[18].mxu1 %v1725_v31 }
 0x3ca   :  { %880 = vmatprep.mubr.f32.mxu0 %v1727_v45  ;;  %1073 = vmatprep.mubr.f32.mxu1 %v1727_v45  ;;  %v1731_v20 = vpop.eup %1730 }
 0x3cb   :  { %v1733_v51 = vpop.eup %1732 }
 0x3cd   :  { %881 = vmatmul.mubr.f32.gmra.mrb[20].mxu0 %v1729_v46  ;;  %1074 = vmatmul.mubr.f32.gmra.mrb[20].mxu1 %v1729_v46 }
 0x3ce   :  { %885 = vmatprep.mubr.f32.mxu0 %v1731_v20  ;;  %1078 = vmatprep.mubr.f32.mxu1 %v1731_v20  ;;  %v1773_v20 = vmov 3  }
 0x3d1   :  { %886 = vmatmul.mubr.f32.gmra.mrb[22].mxu0 %v1733_v51  ;;  %1079 = vmatmul.mubr.f32.gmra.mrb[22].mxu1 %v1733_v51  ;;  %v1774_v51 = vmov 1  }
 0x47b   :  { %v1449_v53 = vpop.f32.mrb[8].mxu0  ;;  %v1505_v54 = vpop.f32.mrb[8].mxu1 }
 0x47c   :  { %v1450_v55 = vpop.f32.mrb[9].mxu0  ;;  %v1506_v56 = vpop.f32.mrb[9].mxu1 }
 0x47d   :  { %v1451_v57 = vadd.f32 %v1450_v55, %v1449_v53  ;;  %v2364_v19 = vadd.f32 %v1506_v56, %v1505_v54 }
 0x47f   :  { %v891_v33 = vmax.f32 %v1451_v57, 1e-30  ;;  %v1452_v62 = vpop.f32.mrb[10].mxu0  ;;  %v1508_v37 = vpop.f32.mrb[10].mxu1 }
 0x480   :  { %v1453_v63 = vpop.f32.mrb[11].mxu0  ;;  %v1509_v38 = vpop.f32.mrb[11].mxu1 }
 0x481   :  { %1734 = vrcp.f32 %v891_v33  ;;  %v2366_v48 = vadd.f32 %v1453_v63, %v1452_v62  ;;  %v2368_v47 = vadd.f32 %v1509_v38, %v1508_v37 }
 0x483   :  { %v892_v63 = vmax.f32 %v2366_v48, 1e-30 }
 0x48b   :  { %v2370_v58 = vpop.eup %1734 }
 0x48c   :  { %1086 = vperm.xlu0 %1673, %v2370_v58  }
 0x490   :  { %v1455_v18 = vpop.f32.mrb[12].mxu0  ;;  %v1511_v61 = vpop.f32.mrb[12].mxu1  ;;  %1676 = vset.pattern.permute.xlu0 %v1772_v0 }
 0x491   :  { %v1456_v2 = vpop.f32.mrb[13].mxu0  ;;  %v1512_v4 = vpop.f32.mrb[13].mxu1 }
 0x492   :  { %v1457_v41 = vadd.f32 %v1456_v2, %v1455_v18  ;;  %v2374_v5 = vadd.f32 %v1512_v4, %v1511_v61 }
 0x494   :  { %v893_v6 = vmax.f32 %v1457_v41, 1e-30  ;;  %v1458_v9 = vpop.f32.mrb[14].mxu0  ;;  %v1514_v32 = vpop.f32.mrb[14].mxu1 }
 0x495   :  { %v1459_v59 = vpop.f32.mrb[15].mxu0  ;;  %v1515_v10 = vpop.f32.mrb[15].mxu1 }
 0x496   :  { %1736 = vrcp.f32 %v893_v6  ;;  %v1460_v13 = vadd.f32 %v1459_v59, %v1458_v9  ;;  %v2376_v21 = vadd.f32 %v1515_v10, %v1514_v32 }
 0x498   :  { %v894_v22 = vmax.f32 %v1460_v13, 1e-30  ;;  %v1461_v12 = vpop.f32.mrb[16].mxu0  ;;  %v1517_v24 = vpop.f32.mrb[16].mxu1 }
 0x499   :  { %v1462_v17 = vpop.f32.mrb[17].mxu0  ;;  %v1518_v26 = vpop.f32.mrb[17].mxu1 }
 0x49a   :  { %1738 = vrcp.f32 %v894_v22  ;;  %v1463_v14 = vadd.f32 %v1462_v17, %v1461_v12  ;;  %v2378_v39 = vadd.f32 %v1518_v26, %v1517_v24 }
 0x49c   :  { %v895_v60 = vmax.f32 %v1463_v14, 1e-30  ;;  %v1464_v15 = vpop.f32.mrb[18].mxu0  ;;  %v1520_v3 = vpop.f32.mrb[18].mxu1 }
 0x49d   :  { %v1465_v29 = vpop.f32.mrb[19].mxu0  ;;  %v1521_v49 = vpop.f32.mrb[19].mxu1 }
 0x49e   :  { %v1466_v30 = vadd.f32 %v1465_v29, %v1464_v15  ;;  %v2380_v40 = vadd.f32 %v1521_v49, %v1520_v3  ;;  %1740 = vrcp.f32 %v895_v60 }
 0x4a0   :  { %v1737_v36 = vpop.eup %1736  ;;  %v1467_v8 = vpop.f32.mrb[20].mxu0  ;;  %v896_v38 = vmax.f32 %v1466_v30, 1e-30 }
 0x4a1   :  { %v1523_v42 = vpop.f32.mrb[20].mxu1  ;;  %1165 = vperm.xlu0 %1676, %v1737_v36   ;;  %1096 = vperm.xlu1 %1674, %v1737_v36   ;;  %v1468_v23 = vpop.f32.mrb[21].mxu0 }
 0x4a2   :  { %v1524_v11 = vpop.f32.mrb[21].mxu1  ;;  %v1469_v16 = vadd.f32 %v1468_v23, %v1467_v8 }
 0x4a3   :  { %v2382_v34 = vadd.f32 %v1524_v11, %v1523_v42 }
 0x4a4   :  { %v1739_v43 = vpop.eup %1738  ;;  %v1470_v31 = vpop.f32.mrb[22].mxu0  ;;  %v897_v46 = vmax.f32 %v1469_v16, 1e-30 }
 0x4a5   :  { %v1526_v45 = vpop.f32.mrb[22].mxu1  ;;  %1681 = vset.pattern.permute.xlu0 %v1773_v20  ;;  %1675 = vset.pattern.permute.xlu1 %v1774_v51  ;;  %v1471_v53 = vpop.f32.mrb[23].mxu0 }
 0x4a6   :  { %v1527_v54 = vpop.f32.mrb[23].mxu1  ;;  %v1472_v55 = vadd.f32 %v1471_v53, %v1470_v31  ;;  %1201 = vperm.xlu0 %1681, %v1739_v43   ;;  %1133 = vperm.xlu1 %1675, %v1737_v36   ;;  %1742 = vrcp.f32 %v897_v46 }
 0x4a7   :  { %v2386_v56 = vadd.f32 %v1527_v54, %v1526_v45 }
 0x4a8   :  { %v1741_v57 = vpop.eup %1740  ;;  %v898_v33 = vmax.f32 %v1472_v55, 1e-30 }
 0x4aa   :  { %1684 = vset.pattern.permute.xlu0 %v1772_v0  ;;  %1677 = vset.pattern.permute.xlu1 %v1773_v20  ;;  %1744 = vrcp.f32 %v898_v33 }
 0x4ab   :  { %1173 = vperm.xlu0 %1684, %v1741_v57   ;;  %1197 = vperm.xlu1 %1677, %v1737_v36   ;;  %1746 = vrcp.f32 %v892_v63 }
 0x4ac   :  { %1748 = vrcp.f32 %v896_v38 }
 0x4af   :  { %1685 = vset.pattern.permute.xlu0 %v1773_v20  ;;  %1678 = vset.pattern.permute.xlu1 %v1771_v52 }
 0x4b0   :  { %1205 = vperm.xlu0 %1685, %v1741_v57   ;;  %1101 = vperm.xlu1 %1678, %v1739_v43   ;;  %v1743_v62 = vpop.eup %1742 }
 0x4b4   :  { %1679 = vset.pattern.permute.xlu1 %v1774_v51  ;;  %1213 = vperm.xlu0 %1685, %v1743_v62   ;;  %v1745_v37 = vpop.eup %1744 }
 0x4b5   :  { %1137 = vperm.xlu1 %1679, %v1739_v43   ;;  %v1747_v48 = vpop.eup %1746 }
 0x4b6   :  { %v1749_v18 = vpop.eup %1748 }
 0x4b8   :  { %1693 = vset.pattern.permute.xlu0 %v1771_v52 }
 0x4b9   :  { %1680 = vset.pattern.permute.xlu1 %v1772_v0  ;;  %1121 = vperm.xlu0 %1693, %v1745_v37  }
 0x4ba   :  { %1169 = vperm.xlu1 %1680, %v1739_v43  }
 0x4bd   :  { %1258 = vrot.lane.b32.xlu0 %v1942_v50, %s1775_s3 }
 0x4be   :  { %1682 = vset.pattern.permute.xlu1 %v1771_v52 }
 0x4bf   :  { %1106 = vperm.xlu1 %1682, %v1741_v57  }
 0x4c1   :  { %1262 = vrot.lane.b32.xlu0 %v1987_v7, %s1775_s3 }
 0x4c3   :  { %1683 = vset.pattern.permute.xlu1 %v1774_v51 }
 0x4c4   :  { %1141 = vperm.xlu1 %1683, %v1741_v57  }
 0x4c5   :  { %1266 = vrot.lane.b32.xlu0 %v2028_v35, %s1775_s3 }
 0x4c8   :  { %1686 = vset.pattern.permute.xlu1 %v1771_v52 }
 0x4c9   :  { %1111 = vperm.xlu1 %1686, %v1749_v18   ;;  %1091 = vperm.xlu0 %1693, %v1747_v48  }
 0x4cd   :  { %1687 = vset.pattern.permute.xlu1 %v1774_v51  ;;  %1698 = vset.pattern.permute.xlu0 %v1772_v0 }
 0x4ce   :  { %1145 = vperm.xlu1 %1687, %v1749_v18   ;;  %1157 = vperm.xlu0 %1698, %v2370_v58  }
 0x4d2   :  { %1688 = vset.pattern.permute.xlu1 %v1772_v0  ;;  %1701 = vset.pattern.permute.xlu0 %v1773_v20 }
 0x4d3   :  { %1177 = vperm.xlu1 %1688, %v1749_v18   ;;  %1193 = vperm.xlu0 %1701, %v1747_v48  }
 0x4d7   :  { %1689 = vset.pattern.permute.xlu1 %v1773_v20 }
 0x4d8   :  { %1209 = vperm.xlu1 %1689, %v1749_v18  }
 0x4dc   :  { %1690 = vset.pattern.permute.xlu1 %v1771_v52 }
 0x4dd   :  { %1116 = vperm.xlu1 %1690, %v1743_v62  }
 0x4e1   :  { %1691 = vset.pattern.permute.xlu1 %v1774_v51 }
 0x4e2   :  { %1149 = vperm.xlu1 %1691, %v1743_v62  }
 0x4e6   :  { %1692 = vset.pattern.permute.xlu1 %v1772_v0 }
 0x4e7   :  { %1181 = vperm.xlu1 %1692, %v1743_v62  }
 0x4eb   :  { %1694 = vset.pattern.permute.xlu1 %v1774_v51 }
 0x4ec   :  { %1153 = vperm.xlu1 %1694, %v1745_v37  }
 0x4f0   :  { %1695 = vset.pattern.permute.xlu1 %v1772_v0 }
 0x4f1   :  { %1185 = vperm.xlu1 %1695, %v1745_v37  }
 0x4f5   :  { %1696 = vset.pattern.permute.xlu1 %v1773_v20 }
 0x4f6   :  { %1217 = vperm.xlu1 %1696, %v1745_v37  }
 0x4fa   :  { %1260 = vrot.lane.b32.xlu1 %v1933_v44, %s1775_s3 }
 0x4fb   :  { %1697 = vset.pattern.permute.xlu1 %v1774_v51 }
 0x4fe   :  { %1264 = vrot.lane.b32.xlu1 %v1976_v1, %s1775_s3 }
 0x502   :  { %1268 = vrot.lane.b32.xlu1 %v2018_v25, %s1775_s3 }
 0x506   :  { %1125 = vperm.xlu1 %1697, %v2370_v58  }
 0x50a   :  { %1129 = vperm.xlu1 %1697, %v1747_v48  }
 0x50b   :  { %v2430_v44 = vpop.permute.xlu0 %1086 }
 0x50e   :  { %1699 = vset.pattern.permute.xlu1 %v1772_v0 }
 0x50f   :  { %1161 = vperm.xlu1 %1699, %v1747_v48  }
 0x513   :  { %1700 = vset.pattern.permute.xlu1 %v1773_v20 }
 0x514   :  { %1189 = vperm.xlu1 %1700, %v2370_v58  }
 0x518   :  { %1254 = vrot.lane.b32.xlu1 %v1890_v28, %s1775_s3 }
 0x51c   :  { %1256 = vrot.lane.b32.xlu1 %v1888_v27, %s1775_s3 }
 0x520   :  { %v1166_v50 = vpop.permute.xlu0 %1165  ;;  %v1097_v1 = vpop.permute.xlu1 %1096 }
 0x525   :  { %v1202_v7 = vpop.permute.xlu0 %1201  ;;  %v1134_v25 = vpop.permute.xlu1 %1133 }
 0x526   :  { %v1223_v58 = vsel %vm1220_vm6, %v1097_v1, %v1134_v25 }
 0x527   :  { %v1231_v28 = vsel %vm33_vm0, %v1223_v58, %v1166_v50 }
 0x52a   :  { %v1174_v35 = vpop.permute.xlu0 %1173  ;;  %v1198_v52 = vpop.permute.xlu1 %1197 }
 0x52b   :  { %v1240_v41 = vsel %vm1237_vm7, %v1231_v28, %v1198_v52 }
 0x52c   :  { %v1248_v59 = vmul.f32 %v2374_v5, %v1240_v41 }
 0x52f   :  { %v1206_v61 = vpop.permute.xlu0 %1205  ;;  %v1102_v0 = vpop.permute.xlu1 %1101 }
 0x533   :  { %v1214_v2 = vpop.permute.xlu0 %1213 }
 0x534   :  { %v1138_v4 = vpop.permute.xlu1 %1137 }
 0x535   :  { %v1224_v27 = vsel %vm1220_vm6, %v1102_v0, %v1138_v4 }
 0x538   :  { %v1122_v6 = vpop.permute.xlu0 %1121 }
 0x539   :  { %v1170_v9 = vpop.permute.xlu1 %1169 }
 0x53a   :  { %v1232_v32 = vsel %vm33_vm0, %v1224_v27, %v1170_v9 }
 0x53b   :  { %v1241_v10 = vsel %vm1237_vm7, %v1232_v32, %v1202_v7 }
 0x53c   :  { %v1259_v13 = vpop.permute.xlu0 %1258  ;;  %v1249_v22 = vmul.f32 %v2376_v21, %v1241_v10 }
 0x53d   :  { %v1280_v12 = vadd.f32 %v1259_v13, %v1248_v59 }
 0x53e   :  { %v1107_v24 = vpop.permute.xlu1 %1106 }
 0x53f   :  { %v1296_v17 = vmin.f32 %v1280_v12, 0.0  ;;  %vm1288_vm8 = vcmp.gt.f32.partialorder %v1280_v12, 0.0 }
 0x540   :  { %v1263_v5 = vpop.permute.xlu0 %1262 }
 0x541   :  { %v1306_v26 = vmul.f32 1.442695, %v1296_v17 }
 0x543   :  { %1750 = vpow2.f32 %v1306_v26  ;;  %v1142_v14 = vpop.permute.xlu1 %1141 }
 0x544   :  { %v1225_v60 = vsel %vm1220_vm6, %v1107_v24, %v1142_v14  ;;  %v1267_v33 = vpop.permute.xlu0 %1266 }
 0x545   :  { %v1233_v15 = vsel %vm33_vm0, %v1225_v60, %v1174_v35 }
 0x546   :  { %v1242_v3 = vsel %vm1237_vm7, %v1233_v15, %v1206_v61 }
 0x547   :  { %v1250_v29 = vmul.f32 %v2378_v39, %v1242_v3 }
 0x548   :  { %v1112_v49 = vpop.permute.xlu1 %1111 }
 0x549   :  { %v1282_v30 = vadd.f32 %v1263_v5, %v1250_v29 }
 0x54b   :  { %v1298_v36 = vmin.f32 %v1282_v30, 0.0  ;;  %vm1290_vm9 = vcmp.gt.f32.partialorder %v1282_v30, 0.0 }
 0x54d   :  { %v1751_v8 = vpop.eup %1750  ;;  %v1146_v21 = vpop.permute.xlu1 %1145  ;;  %v1310_v42 = vmul.f32 1.442695, %v1298_v36 }
 0x54e   :  { %v1389_v23 = vadd.f32 -1.0, %v1751_v8  ;;  %v1226_v25 = vsel %vm1220_vm6, %v1112_v49, %v1146_v21 }
 0x54f   :  { %1752 = vpow2.f32 %v1310_v42 }
 0x550   :  { %v1328_v11 = vsel %vm1288_vm8, %v1280_v12, %v1389_v23 }
 0x551   :  { %1336 = vrot.lane.b32.xlu0 %v1328_v11, %s1776_s4 }
 0x552   :  { %v1178_v16 = vpop.permute.xlu1 %1177 }
 0x557   :  { %v1210_v43 = vpop.permute.xlu1 %1209 }
 0x559   :  { %v1753_v31 = vpop.eup %1752 }
 0x55a   :  { %v1391_v45 = vadd.f32 -1.0, %v1753_v31 }
 0x55c   :  { %v1117_v39 = vpop.permute.xlu1 %1116  ;;  %v1330_v46 = vsel %vm1290_vm9, %v1282_v30, %v1391_v45  ;;  %v1092_v30 = vpop.permute.xlu0 %1091 }
 0x55d   :  { %1344 = vrot.lane.b32.xlu0 %v1330_v46, %s1770_s5 }
 0x560   :  { %v1158_v21 = vpop.permute.xlu0 %1157 }
 0x561   :  { %v1150_v20 = vpop.permute.xlu1 %1149 }
 0x562   :  { %v1227_v51 = vsel %vm1220_vm6, %v1117_v39, %v1150_v20 }
 0x564   :  { %v1194_v20 = vpop.permute.xlu0 %1193 }
 0x566   :  { %v1182_v53 = vpop.permute.xlu1 %1181 }
 0x567   :  { %v1235_v54 = vsel %vm33_vm0, %v1227_v51, %v1182_v53 }
 0x568   :  { %v1244_v55 = vsel %vm1237_vm7, %v1235_v54, %v1214_v2 }
 0x569   :  { %v1252_v57 = vmul.f32 %v2382_v34, %v1244_v55  ;;  %v1234_v34 = vsel %vm33_vm0, %v1226_v25, %v1178_v16 }
 0x56a   :  { %v1243_v52 = vsel %vm1237_vm7, %v1234_v34, %v1210_v43 }
 0x56b   :  { %v1154_v62 = vpop.permute.xlu1 %1153  ;;  %v1284_v37 = vadd.f32 %v1267_v33, %v1252_v57  ;;  %v1251_v4 = vmul.f32 %v2380_v40, %v1243_v52 }
 0x56c   :  { %v1228_v18 = vsel %vm1220_vm6, %v1122_v6, %v1154_v62 }
 0x56d   :  { %v1300_v63 = vmin.f32 %v1284_v37, 0.0  ;;  %vm1292_vm10 = vcmp.gt.f32.partialorder %v1284_v37, 0.0 }
 0x56f   :  { %v1314_v38 = vmul.f32 1.442695, %v1300_v63 }
 0x570   :  { %v1186_v48 = vpop.permute.xlu1 %1185 }
 0x571   :  { %1754 = vpow2.f32 %v1314_v38  ;;  %v1236_v50 = vsel %vm33_vm0, %v1228_v18, %v1186_v48 }
 0x575   :  { %v1218_v1 = vpop.permute.xlu1 %1217 }
 0x576   :  { %v1245_v7 = vsel %vm1237_vm7, %v1236_v50, %v1218_v1 }
 0x577   :  { %v1253_v35 = vmul.f32 %v2386_v56, %v1245_v7 }
 0x579   :  { %v1261_v61 = vpop.permute.xlu1 %1260 }
 0x57a   :  { %v1281_v0 = vadd.f32 %v1261_v61, %v1249_v22 }
 0x57b   :  { %v1755_v2 = vpop.eup %1754 }
 0x57c   :  { %v1297_v58 = vmin.f32 %v1281_v0, 0.0  ;;  %v1393_v28 = vadd.f32 -1.0, %v1755_v2  ;;  %vm1289_vm11 = vcmp.gt.f32.partialorder %v1281_v0, 0.0 }
 0x57d   :  { %v1265_v41 = vpop.permute.xlu1 %1264 }
 0x57e   :  { %v1308_v6 = vmul.f32 1.442695, %v1297_v58  ;;  %v1283_v27 = vadd.f32 %v1265_v41, %v1251_v4  ;;  %v1332_v9 = vsel %vm1292_vm10, %v1284_v37, %v1393_v28 }
 0x57f   :  { %1352 = vrot.lane.b32.xlu0 %v1332_v9, %s1775_s3 }
 0x580   :  { %1756 = vpow2.f32 %v1308_v6  ;;  %v1299_v56 = vmin.f32 %v1283_v27, 0.0  ;;  %vm1291_vm12 = vcmp.gt.f32.partialorder %v1283_v27, 0.0 }
 0x581   :  { %v1269_v32 = vpop.permute.xlu1 %1268 }
 0x582   :  { %v1312_v59 = vmul.f32 1.442695, %v1299_v56  ;;  %v1285_v10 = vadd.f32 %v1269_v32, %v1253_v35 }
 0x584   :  { %1758 = vpow2.f32 %v1312_v59  ;;  %v1301_v13 = vmin.f32 %v1285_v10, 0.0  ;;  %vm1293_vm13 = vcmp.gt.f32.partialorder %v1285_v10, 0.0 }
 0x585   :  { %v1126_v29 = vpop.permute.xlu1 %1125 }
 0x586   :  { %v1316_v22 = vmul.f32 1.442695, %v1301_v13  ;;  %v1221_v36 = vsel %vm1220_vm6, %v2430_v44, %v1126_v29 }
 0x587   :  { %v1229_v42 = vsel %vm33_vm0, %v1221_v36, %v1158_v21 }
 0x588   :  { %1760 = vpow2.f32 %v1316_v22 }
 0x589   :  { %v1130_v5 = vpop.permute.xlu1 %1129 }
 0x58a   :  { %v1757_v12 = vpop.eup %1756  ;;  %v1222_v39 = vsel %vm1220_vm6, %v1092_v30, %v1130_v5 }
 0x58b   :  { %v1390_v24 = vadd.f32 -1.0, %v1757_v12 }
 0x58d   :  { %v1329_v40 = vsel %vm1289_vm11, %v1281_v0, %v1390_v24 }
 0x58e   :  { %v1759_v17 = vpop.eup %1758  ;;  %1338 = vrot.lane.b32.xlu1 %v1329_v40, %s1776_s4  ;;  %v1162_v49 = vpop.permute.xlu1 %1161 }
 0x58f   :  { %v1392_v26 = vadd.f32 -1.0, %v1759_v17  ;;  %v1230_v46 = vsel %vm33_vm0, %v1222_v39, %v1162_v49 }
 0x590   :  { %v1239_v44 = vsel %vm1237_vm7, %v1230_v46, %v1194_v20 }
 0x591   :  { %v1331_v14 = vsel %vm1291_vm12, %v1283_v27, %v1392_v26  ;;  %v1247_v53 = vmul.f32 %v2368_v47, %v1239_v44 }
 0x592   :  { %v1761_v60 = vpop.eup %1760  ;;  %1346 = vrot.lane.b32.xlu1 %v1331_v14, %s1770_s5 }
 0x593   :  { %v1394_v15 = vadd.f32 -1.0, %v1761_v60  ;;  %v1190_v8 = vpop.permute.xlu1 %1189 }
 0x594   :  { %v1238_v23 = vsel %vm1237_vm7, %v1229_v42, %v1190_v8 }
 0x595   :  { %v1333_v3 = vsel %vm1293_vm13, %v1285_v10, %v1394_v15  ;;  %v1246_v11 = vmul.f32 %v2364_v19, %v1238_v23 }
 0x596   :  { %1354 = vrot.lane.b32.xlu1 %v1333_v3, %s1775_s3 }
 0x597   :  { %v1255_v16 = vpop.permute.xlu1 %1254 }
 0x598   :  { %v1278_v43 = vadd.f32 %v1255_v16, %v1246_v11 }
 0x59a   :  { %v1294_v31 = vmin.f32 %v1278_v43, 0.0  ;;  %vm1286_vm14 = vcmp.gt.f32.partialorder %v1278_v43, 0.0 }
 0x59b   :  { %v1257_v51 = vpop.permute.xlu1 %1256 }
 0x59c   :  { %v1302_v45 = vmul.f32 1.442695, %v1294_v31  ;;  %v1279_v55 = vadd.f32 %v1257_v51, %v1247_v53 }
 0x59e   :  { %1762 = vpow2.f32 %v1302_v45  ;;  %v1295_v19 = vmin.f32 %v1279_v55, 0.0  ;;  %vm1287_vm0 = vcmp.gt.f32.partialorder %v1279_v55, 0.0 }
 0x5a0   :  { %v1304_v38 = vmul.f32 1.442695, %v1295_v19 }
 0x5a2   :  { %1764 = vpow2.f32 %v1304_v38 }
 0x5a8   :  { %v1763_v54 = vpop.eup %1762 }
 0x5a9   :  { %v1387_v33 = vadd.f32 -1.0, %v1763_v54 }
 0x5ab   :  { %v1326_v37 = vsel %vm1286_vm14, %v1278_v43, %v1387_v33 }
 0x5ac   :  { %v1765_v47 = vpop.eup %1764 }
 0x5ad   :  { %v1388_v7 = vadd.f32 -1.0, %v1765_v47 }
 0x5af   :  { %v1327_v35 = vsel %vm1287_vm0, %v1279_v55, %v1388_v7 }
 0x5c3   :  { %v1337_v57 = vpop.permute.xlu0 %1336 }
 0x5c4   :  { %v1358_v63 = vsel %vm167_vm1, %v1326_v37, %v1337_v57 }
 0x5cf   :  { %v1345_v62 = vpop.permute.xlu0 %1344 }
 0x5d0   :  { %v1360_v48 = vsel %vm577_vm2, %v1358_v63, %v1345_v62 }
 0x5f1   :  { %v1353_v18 = vpop.permute.xlu0 %1352 }
 0x5f2   :  { %v1363_v50 = vsel %vm1362_vm15, %v1360_v48, %v1353_v18 }
 0x5f3   :  { %1365 = vst [vmem:[%s2491_s6] sm:$0xff] %v1363_v50 }
 0x600   :  { %v1339_v1 = vpop.permute.xlu1 %1338 }
 0x601   :  { %v1359_v34 = vsel %vm167_vm1, %v1327_v35, %v1339_v1 }
 0x604   :  { %v1347_v25 = vpop.permute.xlu1 %1346 }
 0x605   :  { %v1361_v52 = vsel %vm577_vm2, %v1359_v34, %v1347_v25 }
 0x608   :  { %v1355_v61 = vpop.permute.xlu1 %1354 }
 0x609   :  { %v1364_v0 = vsel %vm1362_vm15, %v1361_v52, %v1355_v61 }
 0x60a   :  { %1366 = vst [vmem:[%s2491_s6 + $0x8] sm:$0xff] %v1364_v0 }

</bundles_post_ra>
